<compile_context>
chip_gen: v5e
topology: v5e:2x2
jax: 0.10.0
libtpu: 0.0.40
codegen_flags: <defaults>
</compile_context>

<pallas_src>
import functools

import jax
import jax.numpy as jnp
from jax.experimental import pallas as pl
from jax.experimental.pallas import tpu as pltpu


BN_EPS = 1e-5


# -----------------------------------------------------------------------------
# Pallas kernels
# -----------------------------------------------------------------------------
def _confidence_kernel(x_ref, w1_ref, b1_ref, w2_ref, cls_ref, score_ref):
    """Fused confidence MLP, channels-on-sublanes / points-on-lanes layout.

    x_ref:   (1, C, TN) f32 block of features (B, C, N).
    w1_ref:  (C, C)  bf16  conv1 weight with BN scale folded in.
    b1_ref:  (C, 1)  f32   fused BN bias.
    w2_ref:  (ncls, C) bf16 conv2 weight (no bias).
    cls_ref: (1, ncls, TN) f32 logits; score_ref: (1, 1, TN) f32 max-class logit.
    """
    x = x_ref[0].astype(jnp.bfloat16)                                   # (C, TN)
    h = jnp.dot(w1_ref[...], x, preferred_element_type=jnp.float32)     # (C, TN)
    h = jnp.maximum(h + b1_ref[...], 0.0)                               # BN + ReLU
    cls = jnp.dot(w2_ref[...], h.astype(jnp.bfloat16),
                  preferred_element_type=jnp.float32)                   # (ncls, TN)
    cls_ref[0] = cls.astype(cls_ref.dtype)
    score_ref[0] = jnp.max(cls, axis=0, keepdims=True).astype(score_ref.dtype)


def _group_agg_kernel(*refs, scale_cfgs, K):
    """Fused multi-scale grouped MLP + neighbour max-pool + aggregation conv.

    Per scale refs: rel_xyz (1,3,S*K), feats (1,C,S*K), w_xyz (c1,3), w_feat (c1,C),
    b1 (c1,1), [w (co,ci), b (co,1)] * n_extra, agg_w_slice (agg,c_last).
    Then: agg bias (agg,1), out (1, agg, K).
    Lanes of the S*K axis are s-major (flat index = s*K + k).
    """
    it = iter(refs)
    acc = None
    for (nsample, n_extra) in scale_cfgs:
        rel_ref = next(it)
        feat_ref = next(it)
        wx_ref = next(it)
        wf_ref = next(it)
        b1_ref = next(it)
        extras = [(next(it), next(it)) for _ in range(n_extra)]
        aggw_ref = next(it)

        # layer 1: rel_xyz / feature halves of the (3+C) x c1 conv, BN folded.
        h = (jnp.dot(wx_ref[...], rel_ref[0], preferred_element_type=jnp.float32)
             + jnp.dot(wf_ref[...], feat_ref[0], preferred_element_type=jnp.float32))
        h = jnp.maximum(h + b1_ref[...], 0.0)                            # (c1, S*K)

        # remaining 1x1 conv + BN + ReLU layers.
        for (w_ref, b_ref) in extras:
            y = jnp.dot(w_ref[...], h.astype(jnp.bfloat16),
                        preferred_element_type=jnp.float32)
            h = jnp.maximum(y + b_ref[...], 0.0)

        # max-pool over neighbours: s-major lanes -> contiguous static lane slices.
        pooled = h[:, 0:K]
        for s in range(1, nsample):
            pooled = jnp.maximum(pooled, h[:, s * K:(s + 1) * K])        # (c_last, K)

        # this scale's slice of the aggregation conv (agg BN scale folded into it).
        part = jnp.dot(aggw_ref[...], pooled.astype(jnp.bfloat16),
                       preferred_element_type=jnp.float32)               # (agg, K)
        acc = part if acc is None else acc + part

    aggb_ref = next(it)
    out_ref = next(it)
    out_ref[0] = jnp.maximum(acc + aggb_ref[...], 0.0).astype(out_ref.dtype)


# -----------------------------------------------------------------------------
# Pallas wrappers
# -----------------------------------------------------------------------------
def confidence_forward(features, params):
    """features: (B, C, N) f32. Returns (cls (B,ncls,N) f32, score (B,1,N) f32)."""
    B, C, N = features.shape
    ncls = params["conf_w2"].shape[0]

    w1f = (params["conf_s1"][:, None] * params["conf_w1"]).astype(jnp.bfloat16)
    b1 = params["conf_b1"].reshape(C, 1).astype(jnp.float32)
    w2 = params["conf_w2"].astype(jnp.bfloat16)

    # tile the lane (N) axis so the input DMA pipelines with the matmul.
    TN = N
    for cand in (1024, 512, 256, 128):
        if N % cand == 0:
            TN = cand
            break

    return pl.pallas_call(
        _confidence_kernel,
        out_shape=(jax.ShapeDtypeStruct((B, ncls, N), jnp.float32),
                   jax.ShapeDtypeStruct((B, 1, N), jnp.float32)),
        grid=(B, N // TN),
        in_specs=[
            pl.BlockSpec((1, C, TN), lambda b, n: (b, 0, n)),
            pl.BlockSpec((C, C), lambda b, n: (0, 0)),
            pl.BlockSpec((C, 1), lambda b, n: (0, 0)),
            pl.BlockSpec((ncls, C), lambda b, n: (0, 0)),
        ],
        out_specs=(pl.BlockSpec((1, ncls, TN), lambda b, n: (b, 0, n)),
                   pl.BlockSpec((1, 1, TN), lambda b, n: (b, 0, n))),
        compiler_params=pltpu.CompilerParams(
            dimension_semantics=("parallel", "parallel"),
            vmem_limit_bytes=32 * 1024 * 1024),
    )(features, w1f, b1, w2)


def group_agg_forward(scale_inputs, params, *, num_points, num_neighbors):
    """scale_inputs: per scale (rel_xyz_t (B,3,S*K) bf16, feats_t (B,C,S*K) bf16).

    Returns new features (B, agg, K) f32.
    """
    B = scale_inputs[0][0].shape[0]
    K = num_points
    num_agg = params["agg_w"].shape[0]
    agg_scale = params["agg_s"]

    inputs, in_specs, scale_cfgs = [], [], []
    off = 0
    for (rel, feat), sp, nsample in zip(scale_inputs, params["scales"], num_neighbors):
        SK = nsample * K
        C = feat.shape[1]
        c1 = sp["w_xyz"].shape[0]
        # fold BN scale into the (split) first-layer weights.
        wx = (sp["s1"][:, None] * sp["w_xyz"]).astype(jnp.bfloat16)
        wf = (sp["s1"][:, None] * sp["w_feat"]).astype(jnp.bfloat16)
        b1 = sp["b1"].reshape(c1, 1).astype(jnp.float32)
        inputs += [rel, feat, wx, wf, b1]
        in_specs += [
            pl.BlockSpec((1, 3, SK), lambda b: (b, 0, 0)),
            pl.BlockSpec((1, C, SK), lambda b: (b, 0, 0)),
            pl.BlockSpec((c1, 3), lambda b: (0, 0)),
            pl.BlockSpec((c1, C), lambda b: (0, 0)),
            pl.BlockSpec((c1, 1), lambda b: (0, 0)),
        ]
        cin = c1
        for (w, s, bb) in sp["extra"]:
            cout = w.shape[0]
            inputs += [(s[:, None] * w).astype(jnp.bfloat16),
                       bb.reshape(cout, 1).astype(jnp.float32)]
            in_specs += [pl.BlockSpec((cout, cin), lambda b: (0, 0)),
                         pl.BlockSpec((cout, 1), lambda b: (0, 0))]
            cin = cout
        c_last = cin
        # this scale's slice of the aggregation weight, agg BN scale folded in
        # (valid: scale distributes over the sum of per-scale partials).
        aggw = (agg_scale[:, None] * params["agg_w"][:, off:off + c_last]
                ).astype(jnp.bfloat16)
        off += c_last
        inputs.append(aggw)
        in_specs.append(pl.BlockSpec((num_agg, c_last), lambda b: (0, 0)))
        scale_cfgs.append((nsample, len(sp["extra"])))

    aggb = params["agg_b"].reshape(num_agg, 1).astype(jnp.float32)
    inputs.append(aggb)
    in_specs.append(pl.BlockSpec((num_agg, 1), lambda b: (0, 0)))

    kernel = functools.partial(_group_agg_kernel, scale_cfgs=tuple(scale_cfgs), K=K)

    return pl.pallas_call(
        kernel,
        out_shape=jax.ShapeDtypeStruct((B, num_agg, K), jnp.float32),
        grid=(B,),
        in_specs=in_specs,
        out_specs=pl.BlockSpec((1, num_agg, K), lambda b: (b, 0, 0)),
        compiler_params=pltpu.CompilerParams(
            dimension_semantics=("parallel",),
            vmem_limit_bytes=32 * 1024 * 1024),
    )(*inputs)


# -----------------------------------------------------------------------------
# Plain-JAX glue (data-dependent index selection + gathers)
# -----------------------------------------------------------------------------
def ball_query(points, centers, radius, nsample):
    """CUDA-style ball query: first `nsample` points within radius, padded with the
    first valid index (fallback to index 0 when no point is in the ball).
    points: (B, N, 3), centers: (B, K, 3) -> (B, K, S) int32."""
    N = points.shape[1]
    d2 = jnp.sum((centers[:, :, None, :] - points[:, None, :, :]) ** 2, axis=-1)
    in_ball = d2 < radius * radius                      # (B, K, N)
    cand = jnp.where(in_ball, jnp.arange(N)[None, None, :], N)
    picked = jnp.sort(cand, axis=-1)[..., :nsample]     # (B, K, S)
    first = picked[..., :1]
    idx = jnp.where(picked >= N, first, picked)
    return jnp.where(idx >= N, 0, idx).astype(jnp.int32)


# -----------------------------------------------------------------------------
# Parameters (deterministic synthetic init; BatchNorm in eval mode).
# Weight layout is (out, in); BN is folded as scale/bias with
# bias = beta - running_mean * scale (running_mean=0, var=1 synthetic init).
# -----------------------------------------------------------------------------
def _bn_fold(c):
    gamma = jnp.ones((c,), jnp.float32)
    beta = jnp.zeros((c,), jnp.float32)
    mean = jnp.zeros((c,), jnp.float32)
    var = jnp.ones((c,), jnp.float32)
    scale = gamma / jnp.sqrt(var + BN_EPS)
    bias = beta - mean * scale
    return scale, bias


def init_params(key, num_classes, in_channels, mlps_channels, aggregation_channels):
    keys = iter(jax.random.split(key, 64))
    C = in_channels
    p = {}

    # confidence layer: Conv1d(C,C,1,no-bias)+BN+ReLU ; Conv1d(C,num_classes,1,no-bias)
    p["conf_w1"] = 0.2 * jax.random.normal(next(keys), (C, C), jnp.float32)
    p["conf_s1"], p["conf_b1"] = _bn_fold(C)
    p["conf_w2"] = 0.2 * jax.random.normal(next(keys), (num_classes, C), jnp.float32)

    # per-scale grouped MLPs; first layer split into xyz / feature halves
    # (its input is concat([rel_xyz, features]) with use_xyz=True).
    p["scales"] = []
    for mlp in mlps_channels:
        c1 = mlp[0]
        w_xyz = 0.2 * jax.random.normal(next(keys), (c1, 3), jnp.float32)
        w_feat = 0.2 * jax.random.normal(next(keys), (c1, C), jnp.float32)
        s1, b1 = _bn_fold(c1)
        extra = []
        cin = c1
        for cout in mlp[1:]:
            w = 0.2 * jax.random.normal(next(keys), (cout, cin), jnp.float32)
            s, b = _bn_fold(cout)
            extra.append((w, s, b))
            cin = cout
        p["scales"].append(dict(w_xyz=w_xyz, w_feat=w_feat, s1=s1, b1=b1, extra=extra))

    # aggregation: Conv1d(sum(last mlps), agg, 1, no-bias) + BN + ReLU
    sum_c = sum(m[-1] for m in mlps_channels)
    p["agg_w"] = 0.2 * jax.random.normal(next(keys), (aggregation_channels, sum_c),
                                         jnp.float32)
    p["agg_s"], p["agg_b"] = _bn_fold(aggregation_channels)
    return p


# -----------------------------------------------------------------------------
# Forward pass
# -----------------------------------------------------------------------------
def pointnet2_sa_msg_forward(points, features, params, *, num_points,
                             num_neighbors, radii):
    """points: (B, N, 3)   features: (B, C, N) [PyTorch channels-first].

    Returns (sampled_points (B,K,3), features (B,agg,K), cls_preds (B,num_cls,N)).
    """
    B, N, _ = points.shape
    assert N > num_points
    K = num_points

    # --- fused confidence layer (CentroidAware); cls_preds returned as raw logits,
    #     exactly as the PyTorch module does.  sigmoid dropped before top-k
    #     (monotonic -> identical ranking). ---
    cls_preds, score = confidence_forward(features, params)        # (B,ncls,N),(B,1,N)
    score = score[:, 0, :]                                          # (B, N)

    # --- centroid-aware sampling: top-k over max-class score ---
    _, idx = jax.lax.top_k(score, K)                                # (B, K)
    sampled_points = jnp.take_along_axis(points, idx[..., None], axis=1)   # (B, K, 3)

    # --- multi-scale grouping: ball query + XLA gather into lane-dense transposed
    #     slabs (channels on sublanes, neighbour axis s-major on lanes). ---
    points_t = jnp.transpose(points, (0, 2, 1))                     # (B, 3, N)
    centers_t = jnp.transpose(sampled_points, (0, 2, 1))            # (B, 3, K)

    scale_inputs = []
    for radius, nsample in zip(radii, num_neighbors):
        grp = ball_query(points, sampled_points, radius, nsample)   # (B, K, S)
        idx_flat = jnp.transpose(grp, (0, 2, 1)).reshape(B, nsample * K)   # s-major
        g_xyz = jnp.take_along_axis(points_t, idx_flat[:, None, :], axis=2)   # (B,3,S*K)
        g_feat = jnp.take_along_axis(features, idx_flat[:, None, :], axis=2)  # (B,C,S*K)
        rel = g_xyz - jnp.tile(centers_t, (1, 1, nsample))          # relative xyz
        scale_inputs.append((rel.astype(jnp.bfloat16), g_feat.astype(jnp.bfloat16)))

    # --- one fused kernel: per-scale MLPs + neighbour max-pool + aggregation ---
    new_features = group_agg_forward(scale_inputs, params, num_points=K,
                                     num_neighbors=num_neighbors)   # (B, agg, K)

    return sampled_points, new_features, cls_preds


# -----------------------------------------------------------------------------
# Main
# -----------------------------------------------------------------------------
if __name__ == "__main__":
    # small config consistent with the module's constructor
    num_classes = 3
    num_points = 16            # K
    sampling_method = "CentroidAware"
    num_neighbors = (8, 16)
    radii = (0.25, 0.5)
    in_channels = 8
    mlps_channels = ((16, 16), (16, 32))
    aggregation_channels = 32

    B, N = 2, 64

    key = jax.random.PRNGKey(0)
    k_pts, k_feat, k_param = jax.random.split(key, 3)
    points = jax.random.uniform(k_pts, (B, N, 3), jnp.float32)               # (B, N, 3)
    features = jax.random.normal(k_feat, (B, in_channels, N), jnp.float32)   # (B, C, N)

    params = init_params(k_param, num_classes, in_channels, mlps_channels,
                         aggregation_channels)

    fwd = jax.jit(functools.partial(pointnet2_sa_msg_forward,
                                    num_points=num_points,
                                    num_neighbors=num_neighbors,
                                    radii=radii))
    sampled_points, new_features, cls_preds = fwd(points, features, params)
    jax.block_until_ready((sampled_points, new_features, cls_preds))

    assert sampled_points.shape == (B, num_points, 3)
    assert new_features.shape == (B, aggregation_channels, num_points)
    assert cls_preds.shape == (B, num_classes, N)
    print("KERNEL_OK")
</pallas_src>

<mosaic_0001>
module attributes {stable_mosaic.version = 11 : i64} {
  func.func @_confidence_kernel(%arg0: i32, %arg1: i32, %arg2: memref<1x8x64xf32, #tpu.memory_space<vmem>>, %arg3: memref<8x8xbf16, #tpu.memory_space<vmem>>, %arg4: memref<8x1xf32, #tpu.memory_space<vmem>>, %arg5: memref<3x8xbf16, #tpu.memory_space<vmem>>, %arg6: memref<1x3x64xf32, #tpu.memory_space<vmem>>, %arg7: memref<1x1x64xf32, #tpu.memory_space<vmem>>) attributes {dimension_semantics = [#tpu.dimension_semantics<parallel>, #tpu.dimension_semantics<parallel>], iteration_bounds = array<i64: 2, 1>, scalar_prefetch = 0 : i64, scratch_operands = 0 : i64, tpu.core_type = #tpu.core_type<tc>, window_params = [{transform_indices = @transform_0, window_bounds = array<i64: 1, 8, 64>}, {pipeline_mode = #tpu.pipeline_mode<synchronous>, transform_indices = @transform_1, window_bounds = array<i64: 8, 8>}, {pipeline_mode = #tpu.pipeline_mode<synchronous>, transform_indices = @transform_2, window_bounds = array<i64: 8, 1>}, {pipeline_mode = #tpu.pipeline_mode<synchronous>, transform_indices = @transform_3, window_bounds = array<i64: 3, 8>}, {transform_indices = @transform_4, window_bounds = array<i64: 1, 3, 64>}, {transform_indices = @transform_5, window_bounds = array<i64: 1, 1, 64>}]} {
    %c0 = arith.constant 0 : index
    %c0_0 = arith.constant 0 : index
    %c0_1 = arith.constant 0 : index
    %0 = vector.load %arg2[%c0, %c0_0, %c0_1] : memref<1x8x64xf32, #tpu.memory_space<vmem>>, vector<1x8x64xf32>
    %1 = vector.shape_cast %0 : vector<1x8x64xf32> to vector<8x64xf32>
    %2 = arith.truncf %1 : vector<8x64xf32> to vector<8x64xbf16>
    %c0_2 = arith.constant 0 : index
    %c0_3 = arith.constant 0 : index
    %3 = vector.load %arg3[%c0_2, %c0_3] : memref<8x8xbf16, #tpu.memory_space<vmem>>, vector<8x8xbf16>
    %cst = arith.constant dense<0.000000e+00> : vector<8x64xf32>
    %4 = tpu.matmul %3, %2, %cst {dimension_numbers = #tpu.dot_dimension_numbers<[1], [0], [0], [1], [0, 0, 1, 1], [], []>} : vector<8x8xbf16>, vector<8x64xbf16>, vector<8x64xf32> -> vector<8x64xf32>
    %c0_4 = arith.constant 0 : index
    %c0_5 = arith.constant 0 : index
    %5 = vector.load %arg4[%c0_4, %c0_5] : memref<8x1xf32, #tpu.memory_space<vmem>>, vector<8x1xf32>
    %6 = vector.broadcast %5 : vector<8x1xf32> to vector<8x64xf32>
    %7 = arith.addf %4, %6 : vector<8x64xf32>
    %cst_6 = arith.constant 0.000000e+00 : f32
    %8 = vector.broadcast %cst_6 : f32 to vector<8x64xf32>
    %9 = arith.maximumf %7, %8 : vector<8x64xf32>
    %c0_7 = arith.constant 0 : index
    %c0_8 = arith.constant 0 : index
    %10 = vector.load %arg5[%c0_7, %c0_8] : memref<3x8xbf16, #tpu.memory_space<vmem>>, vector<3x8xbf16>
    %11 = arith.truncf %9 : vector<8x64xf32> to vector<8x64xbf16>
    %cst_9 = arith.constant dense<0.000000e+00> : vector<3x64xf32>
    %12 = tpu.matmul %10, %11, %cst_9 {dimension_numbers = #tpu.dot_dimension_numbers<[1], [0], [0], [1], [0, 0, 1, 1], [], []>} : vector<3x8xbf16>, vector<8x64xbf16>, vector<3x64xf32> -> vector<3x64xf32>
    %c0_10 = arith.constant 0 : index
    %c0_11 = arith.constant 0 : index
    %c0_12 = arith.constant 0 : index
    %13 = vector.load %arg6[%c0_10, %c0_11, %c0_12] : memref<1x3x64xf32, #tpu.memory_space<vmem>>, vector<1x3x64xf32>
    %14 = vector.shape_cast %13 : vector<1x3x64xf32> to vector<3x64xf32>
    %15 = vector.shape_cast %12 : vector<3x64xf32> to vector<1x3x64xf32>
    tpu.vector_store %arg6[%c0_10, %c0_11, %c0_12], %15 {strides = array<i32>} : memref<1x3x64xf32, #tpu.memory_space<vmem>>, vector<1x3x64xf32>,
    %cst_13 = arith.constant dense<0xFF800000> : vector<64xf32>
    %16 = vector.multi_reduction <maximumf>, %12, %cst_13 [0] : vector<3x64xf32> to vector<64xf32>
    %17 = vector.shape_cast %16 : vector<64xf32> to vector<1x64xf32>
    %c0_14 = arith.constant 0 : index
    %c0_15 = arith.constant 0 : index
    %c0_16 = arith.constant 0 : index
    %18 = vector.load %arg7[%c0_14, %c0_15, %c0_16] : memref<1x1x64xf32, #tpu.memory_space<vmem>>, vector<1x1x64xf32>
    %19 = vector.shape_cast %18 : vector<1x1x64xf32> to vector<1x64xf32>
    %20 = vector.shape_cast %17 : vector<1x64xf32> to vector<1x1x64xf32>
    tpu.vector_store %arg7[%c0_14, %c0_15, %c0_16], %20 {strides = array<i32>} : memref<1x1x64xf32, #tpu.memory_space<vmem>>, vector<1x1x64xf32>,
    return
  }
  func.func @transform_0(%arg0: i32, %arg1: i32) -> (i32, i32, i32) {
    %c0_i32 = arith.constant 0 : i32
    %c0_i32_0 = arith.constant 0 : i32
    return %arg0, %c0_i32, %arg1 : i32, i32, i32
  }
  func.func @transform_1(%arg0: i32, %arg1: i32) -> (i32, i32) {
    %c0_i32 = arith.constant 0 : i32
    %c0_i32_0 = arith.constant 0 : i32
    %c0_i32_1 = arith.constant 0 : i32
    return %c0_i32, %c0_i32_0 : i32, i32
  }
  func.func @transform_2(%arg0: i32, %arg1: i32) -> (i32, i32) {
    %c0_i32 = arith.constant 0 : i32
    %c0_i32_0 = arith.constant 0 : i32
    %c0_i32_1 = arith.constant 0 : i32
    return %c0_i32, %c0_i32_0 : i32, i32
  }
  func.func @transform_3(%arg0: i32, %arg1: i32) -> (i32, i32) {
    %c0_i32 = arith.constant 0 : i32
    %c0_i32_0 = arith.constant 0 : i32
    %c0_i32_1 = arith.constant 0 : i32
    return %c0_i32, %c0_i32_0 : i32, i32
  }
  func.func @transform_4(%arg0: i32, %arg1: i32) -> (i32, i32, i32) {
    %c0_i32 = arith.constant 0 : i32
    %c0_i32_0 = arith.constant 0 : i32
    return %arg0, %c0_i32, %arg1 : i32, i32, i32
  }
  func.func @transform_5(%arg0: i32, %arg1: i32) -> (i32, i32, i32) {
    %c0_i32 = arith.constant 0 : i32
    %c0_i32_0 = arith.constant 0 : i32
    return %arg0, %c0_i32, %arg1 : i32, i32, i32
  }
}

module attributes {stable_mosaic.version = 11 : i64} {
  func.func @_group_agg_kernel(%arg0: i32, %arg1: memref<1x3x128xbf16, #tpu.memory_space<vmem>>, %arg2: memref<1x8x128xbf16, #tpu.memory_space<vmem>>, %arg3: memref<16x3xbf16, #tpu.memory_space<vmem>>, %arg4: memref<16x8xbf16, #tpu.memory_space<vmem>>, %arg5: memref<16x1xf32, #tpu.memory_space<vmem>>, %arg6: memref<16x16xbf16, #tpu.memory_space<vmem>>, %arg7: memref<16x1xf32, #tpu.memory_space<vmem>>, %arg8: memref<32x16xbf16, #tpu.memory_space<vmem>>, %arg9: memref<1x3x256xbf16, #tpu.memory_space<vmem>>, %arg10: memref<1x8x256xbf16, #tpu.memory_space<vmem>>, %arg11: memref<16x3xbf16, #tpu.memory_space<vmem>>, %arg12: memref<16x8xbf16, #tpu.memory_space<vmem>>, %arg13: memref<16x1xf32, #tpu.memory_space<vmem>>, %arg14: memref<32x16xbf16, #tpu.memory_space<vmem>>, %arg15: memref<32x1xf32, #tpu.memory_space<vmem>>, %arg16: memref<32x32xbf16, #tpu.memory_space<vmem>>, %arg17: memref<32x1xf32, #tpu.memory_space<vmem>>, %arg18: memref<1x32x16xf32, #tpu.memory_space<vmem>>) attributes {dimension_semantics = [#tpu.dimension_semantics<parallel>], iteration_bounds = array<i64: 2>, scalar_prefetch = 0 : i64, scratch_operands = 0 : i64, tpu.core_type = #tpu.core_type<tc>, window_params = [{transform_indices = @transform_0, window_bounds = array<i64: 1, 3, 128>}, {transform_indices = @transform_1, window_bounds = array<i64: 1, 8, 128>}, {pipeline_mode = #tpu.pipeline_mode<synchronous>, transform_indices = @transform_2, window_bounds = array<i64: 16, 3>}, {pipeline_mode = #tpu.pipeline_mode<synchronous>, transform_indices = @transform_3, window_bounds = array<i64: 16, 8>}, {pipeline_mode = #tpu.pipeline_mode<synchronous>, transform_indices = @transform_4, window_bounds = array<i64: 16, 1>}, {pipeline_mode = #tpu.pipeline_mode<synchronous>, transform_indices = @transform_5, window_bounds = array<i64: 16, 16>}, {pipeline_mode = #tpu.pipeline_mode<synchronous>, transform_indices = @transform_6, window_bounds = array<i64: 16, 1>}, {pipeline_mode = #tpu.pipeline_mode<synchronous>, transform_indices = @transform_7, window_bounds = array<i64: 32, 16>}, {transform_indices = @transform_8, window_bounds = array<i64: 1, 3, 256>}, {transform_indices = @transform_9, window_bounds = array<i64: 1, 8, 256>}, {pipeline_mode = #tpu.pipeline_mode<synchronous>, transform_indices = @transform_10, window_bounds = array<i64: 16, 3>}, {pipeline_mode = #tpu.pipeline_mode<synchronous>, transform_indices = @transform_11, window_bounds = array<i64: 16, 8>}, {pipeline_mode = #tpu.pipeline_mode<synchronous>, transform_indices = @transform_12, window_bounds = array<i64: 16, 1>}, {pipeline_mode = #tpu.pipeline_mode<synchronous>, transform_indices = @transform_13, window_bounds = array<i64: 32, 16>}, {pipeline_mode = #tpu.pipeline_mode<synchronous>, transform_indices = @transform_14, window_bounds = array<i64: 32, 1>}, {pipeline_mode = #tpu.pipeline_mode<synchronous>, transform_indices = @transform_15, window_bounds = array<i64: 32, 32>}, {pipeline_mode = #tpu.pipeline_mode<synchronous>, transform_indices = @transform_16, window_bounds = array<i64: 32, 1>}, {transform_indices = @transform_17, window_bounds = array<i64: 1, 32, 16>}]} {
    %c0 = arith.constant 0 : index
    %c0_0 = arith.constant 0 : index
    %0 = vector.load %arg3[%c0, %c0_0] : memref<16x3xbf16, #tpu.memory_space<vmem>>, vector<16x3xbf16>
    %c0_1 = arith.constant 0 : index
    %c0_2 = arith.constant 0 : index
    %c0_3 = arith.constant 0 : index
    %1 = vector.load %arg1[%c0_1, %c0_2, %c0_3] : memref<1x3x128xbf16, #tpu.memory_space<vmem>>, vector<1x3x128xbf16>
    %2 = vector.shape_cast %1 : vector<1x3x128xbf16> to vector<3x128xbf16>
    %cst = arith.constant dense<0.000000e+00> : vector<16x128xf32>
    %3 = tpu.matmul %0, %2, %cst {dimension_numbers = #tpu.dot_dimension_numbers<[1], [0], [0], [1], [0, 0, 1, 1], [], []>} : vector<16x3xbf16>, vector<3x128xbf16>, vector<16x128xf32> -> vector<16x128xf32>
    %c0_4 = arith.constant 0 : index
    %c0_5 = arith.constant 0 : index
    %4 = vector.load %arg4[%c0_4, %c0_5] : memref<16x8xbf16, #tpu.memory_space<vmem>>, vector<16x8xbf16>
    %c0_6 = arith.constant 0 : index
    %c0_7 = arith.constant 0 : index
    %c0_8 = arith.constant 0 : index
    %5 = vector.load %arg2[%c0_6, %c0_7, %c0_8] : memref<1x8x128xbf16, #tpu.memory_space<vmem>>, vector<1x8x128xbf16>
    %6 = vector.shape_cast %5 : vector<1x8x128xbf16> to vector<8x128xbf16>
    %cst_9 = arith.constant dense<0.000000e+00> : vector<16x128xf32>
    %7 = tpu.matmul %4, %6, %cst_9 {dimension_numbers = #tpu.dot_dimension_numbers<[1], [0], [0], [1], [0, 0, 1, 1], [], []>} : vector<16x8xbf16>, vector<8x128xbf16>, vector<16x128xf32> -> vector<16x128xf32>
    %8 = arith.addf %3, %7 : vector<16x128xf32>
    %c0_10 = arith.constant 0 : index
    %c0_11 = arith.constant 0 : index
    %9 = vector.load %arg5[%c0_10, %c0_11] : memref<16x1xf32, #tpu.memory_space<vmem>>, vector<16x1xf32>
    %10 = vector.broadcast %9 : vector<16x1xf32> to vector<16x128xf32>
    %11 = arith.addf %8, %10 : vector<16x128xf32>
    %cst_12 = arith.constant 0.000000e+00 : f32
    %12 = vector.broadcast %cst_12 : f32 to vector<16x128xf32>
    %13 = arith.maximumf %11, %12 : vector<16x128xf32>
    %c0_13 = arith.constant 0 : index
    %c0_14 = arith.constant 0 : index
    %14 = vector.load %arg6[%c0_13, %c0_14] : memref<16x16xbf16, #tpu.memory_space<vmem>>, vector<16x16xbf16>
    %15 = arith.truncf %13 : vector<16x128xf32> to vector<16x128xbf16>
    %cst_15 = arith.constant dense<0.000000e+00> : vector<16x128xf32>
    %16 = tpu.matmul %14, %15, %cst_15 {dimension_numbers = #tpu.dot_dimension_numbers<[1], [0], [0], [1], [0, 0, 1, 1], [], []>} : vector<16x16xbf16>, vector<16x128xbf16>, vector<16x128xf32> -> vector<16x128xf32>
    %c0_16 = arith.constant 0 : index
    %c0_17 = arith.constant 0 : index
    %17 = vector.load %arg7[%c0_16, %c0_17] : memref<16x1xf32, #tpu.memory_space<vmem>>, vector<16x1xf32>
    %18 = vector.broadcast %17 : vector<16x1xf32> to vector<16x128xf32>
    %19 = arith.addf %16, %18 : vector<16x128xf32>
    %cst_18 = arith.constant 0.000000e+00 : f32
    %20 = vector.broadcast %cst_18 : f32 to vector<16x128xf32>
    %21 = arith.maximumf %19, %20 : vector<16x128xf32>
    %22 = vector.extract_strided_slice %21 {offsets = [0, 0], sizes = [16, 16], strides = [1, 1]} : vector<16x128xf32> to vector<16x16xf32>
    %23 = vector.extract_strided_slice %21 {offsets = [0, 16], sizes = [16, 16], strides = [1, 1]} : vector<16x128xf32> to vector<16x16xf32>
    %24 = arith.maximumf %22, %23 : vector<16x16xf32>
    %25 = vector.extract_strided_slice %21 {offsets = [0, 32], sizes = [16, 16], strides = [1, 1]} : vector<16x128xf32> to vector<16x16xf32>
    %26 = arith.maximumf %24, %25 : vector<16x16xf32>
    %27 = vector.extract_strided_slice %21 {offsets = [0, 48], sizes = [16, 16], strides = [1, 1]} : vector<16x128xf32> to vector<16x16xf32>
    %28 = arith.maximumf %26, %27 : vector<16x16xf32>
    %29 = vector.extract_strided_slice %21 {offsets = [0, 64], sizes = [16, 16], strides = [1, 1]} : vector<16x128xf32> to vector<16x16xf32>
    %30 = arith.maximumf %28, %29 : vector<16x16xf32>
    %31 = vector.extract_strided_slice %21 {offsets = [0, 80], sizes = [16, 16], strides = [1, 1]} : vector<16x128xf32> to vector<16x16xf32>
    %32 = arith.maximumf %30, %31 : vector<16x16xf32>
    %33 = vector.extract_strided_slice %21 {offsets = [0, 96], sizes = [16, 16], strides = [1, 1]} : vector<16x128xf32> to vector<16x16xf32>
    %34 = arith.maximumf %32, %33 : vector<16x16xf32>
    %35 = vector.extract_strided_slice %21 {offsets = [0, 112], sizes = [16, 16], strides = [1, 1]} : vector<16x128xf32> to vector<16x16xf32>
    %36 = arith.maximumf %34, %35 : vector<16x16xf32>
    %c0_19 = arith.constant 0 : index
    %c0_20 = arith.constant 0 : index
    %37 = vector.load %arg8[%c0_19, %c0_20] : memref<32x16xbf16, #tpu.memory_space<vmem>>, vector<32x16xbf16>
    %38 = arith.truncf %36 : vector<16x16xf32> to vector<16x16xbf16>
    %cst_21 = arith.constant dense<0.000000e+00> : vector<32x16xf32>
    %39 = tpu.matmul %37, %38, %cst_21 {dimension_numbers = #tpu.dot_dimension_numbers<[1], [0], [0], [1], [0, 0, 1, 1], [], []>} : vector<32x16xbf16>, vector<16x16xbf16>, vector<32x16xf32> -> vector<32x16xf32>
    %c0_22 = arith.constant 0 : index
    %c0_23 = arith.constant 0 : index
    %40 = vector.load %arg11[%c0_22, %c0_23] : memref<16x3xbf16, #tpu.memory_space<vmem>>, vector<16x3xbf16>
    %c0_24 = arith.constant 0 : index
    %c0_25 = arith.constant 0 : index
    %c0_26 = arith.constant 0 : index
    %41 = vector.load %arg9[%c0_24, %c0_25, %c0_26] : memref<1x3x256xbf16, #tpu.memory_space<vmem>>, vector<1x3x256xbf16>
    %42 = vector.shape_cast %41 : vector<1x3x256xbf16> to vector<3x256xbf16>
    %cst_27 = arith.constant dense<0.000000e+00> : vector<16x256xf32>
    %43 = tpu.matmul %40, %42, %cst_27 {dimension_numbers = #tpu.dot_dimension_numbers<[1], [0], [0], [1], [0, 0, 1, 1], [], []>} : vector<16x3xbf16>, vector<3x256xbf16>, vector<16x256xf32> -> vector<16x256xf32>
    %c0_28 = arith.constant 0 : index
    %c0_29 = arith.constant 0 : index
    %44 = vector.load %arg12[%c0_28, %c0_29] : memref<16x8xbf16, #tpu.memory_space<vmem>>, vector<16x8xbf16>
    %c0_30 = arith.constant 0 : index
    %c0_31 = arith.constant 0 : index
    %c0_32 = arith.constant 0 : index
    %45 = vector.load %arg10[%c0_30, %c0_31, %c0_32] : memref<1x8x256xbf16, #tpu.memory_space<vmem>>, vector<1x8x256xbf16>
    %46 = vector.shape_cast %45 : vector<1x8x256xbf16> to vector<8x256xbf16>
    %cst_33 = arith.constant dense<0.000000e+00> : vector<16x256xf32>
    %47 = tpu.matmul %44, %46, %cst_33 {dimension_numbers = #tpu.dot_dimension_numbers<[1], [0], [0], [1], [0, 0, 1, 1], [], []>} : vector<16x8xbf16>, vector<8x256xbf16>, vector<16x256xf32> -> vector<16x256xf32>
    %48 = arith.addf %43, %47 : vector<16x256xf32>
    %c0_34 = arith.constant 0 : index
    %c0_35 = arith.constant 0 : index
    %49 = vector.load %arg13[%c0_34, %c0_35] : memref<16x1xf32, #tpu.memory_space<vmem>>, vector<16x1xf32>
    %50 = vector.broadcast %49 : vector<16x1xf32> to vector<16x256xf32>
    %51 = arith.addf %48, %50 : vector<16x256xf32>
    %cst_36 = arith.constant 0.000000e+00 : f32
    %52 = vector.broadcast %cst_36 : f32 to vector<16x256xf32>
    %53 = arith.maximumf %51, %52 : vector<16x256xf32>
    %c0_37 = arith.constant 0 : index
    %c0_38 = arith.constant 0 : index
    %54 = vector.load %arg14[%c0_37, %c0_38] : memref<32x16xbf16, #tpu.memory_space<vmem>>, vector<32x16xbf16>
    %55 = arith.truncf %53 : vector<16x256xf32> to vector<16x256xbf16>
    %cst_39 = arith.constant dense<0.000000e+00> : vector<32x256xf32>
    %56 = tpu.matmul %54, %55, %cst_39 {dimension_numbers = #tpu.dot_dimension_numbers<[1], [0], [0], [1], [0, 0, 1, 1], [], []>} : vector<32x16xbf16>, vector<16x256xbf16>, vector<32x256xf32> -> vector<32x256xf32>
    %c0_40 = arith.constant 0 : index
    %c0_41 = arith.constant 0 : index
    %57 = vector.load %arg15[%c0_40, %c0_41] : memref<32x1xf32, #tpu.memory_space<vmem>>, vector<32x1xf32>
    %58 = vector.broadcast %57 : vector<32x1xf32> to vector<32x256xf32>
    %59 = arith.addf %56, %58 : vector<32x256xf32>
    %cst_42 = arith.constant 0.000000e+00 : f32
    %60 = vector.broadcast %cst_42 : f32 to vector<32x256xf32>
    %61 = arith.maximumf %59, %60 : vector<32x256xf32>
    %62 = vector.extract_strided_slice %61 {offsets = [0, 0], sizes = [32, 16], strides = [1, 1]} : vector<32x256xf32> to vector<32x16xf32>
    %63 = vector.extract_strided_slice %61 {offsets = [0, 16], sizes = [32, 16], strides = [1, 1]} : vector<32x256xf32> to vector<32x16xf32>
    %64 = arith.maximumf %62, %63 : vector<32x16xf32>
    %65 = vector.extract_strided_slice %61 {offsets = [0, 32], sizes = [32, 16], strides = [1, 1]} : vector<32x256xf32> to vector<32x16xf32>
    %66 = arith.maximumf %64, %65 : vector<32x16xf32>
    %67 = vector.extract_strided_slice %61 {offsets = [0, 48], sizes = [32, 16], strides = [1, 1]} : vector<32x256xf32> to vector<32x16xf32>
    %68 = arith.maximumf %66, %67 : vector<32x16xf32>
    %69 = vector.extract_strided_slice %61 {offsets = [0, 64], sizes = [32, 16], strides = [1, 1]} : vector<32x256xf32> to vector<32x16xf32>
    %70 = arith.maximumf %68, %69 : vector<32x16xf32>
    %71 = vector.extract_strided_slice %61 {offsets = [0, 80], sizes = [32, 16], strides = [1, 1]} : vector<32x256xf32> to vector<32x16xf32>
    %72 = arith.maximumf %70, %71 : vector<32x16xf32>
    %73 = vector.extract_strided_slice %61 {offsets = [0, 96], sizes = [32, 16], strides = [1, 1]} : vector<32x256xf32> to vector<32x16xf32>
    %74 = arith.maximumf %72, %73 : vector<32x16xf32>
    %75 = vector.extract_strided_slice %61 {offsets = [0, 112], sizes = [32, 16], strides = [1, 1]} : vector<32x256xf32> to vector<32x16xf32>
    %76 = arith.maximumf %74, %75 : vector<32x16xf32>
    %77 = vector.extract_strided_slice %61 {offsets = [0, 128], sizes = [32, 16], strides = [1, 1]} : vector<32x256xf32> to vector<32x16xf32>
    %78 = arith.maximumf %76, %77 : vector<32x16xf32>
    %79 = vector.extract_strided_slice %61 {offsets = [0, 144], sizes = [32, 16], strides = [1, 1]} : vector<32x256xf32> to vector<32x16xf32>
    %80 = arith.maximumf %78, %79 : vector<32x16xf32>
    %81 = vector.extract_strided_slice %61 {offsets = [0, 160], sizes = [32, 16], strides = [1, 1]} : vector<32x256xf32> to vector<32x16xf32>
    %82 = arith.maximumf %80, %81 : vector<32x16xf32>
    %83 = vector.extract_strided_slice %61 {offsets = [0, 176], sizes = [32, 16], strides = [1, 1]} : vector<32x256xf32> to vector<32x16xf32>
    %84 = arith.maximumf %82, %83 : vector<32x16xf32>
    %85 = vector.extract_strided_slice %61 {offsets = [0, 192], sizes = [32, 16], strides = [1, 1]} : vector<32x256xf32> to vector<32x16xf32>
    %86 = arith.maximumf %84, %85 : vector<32x16xf32>
    %87 = vector.extract_strided_slice %61 {offsets = [0, 208], sizes = [32, 16], strides = [1, 1]} : vector<32x256xf32> to vector<32x16xf32>
    %88 = arith.maximumf %86, %87 : vector<32x16xf32>
    %89 = vector.extract_strided_slice %61 {offsets = [0, 224], sizes = [32, 16], strides = [1, 1]} : vector<32x256xf32> to vector<32x16xf32>
    %90 = arith.maximumf %88, %89 : vector<32x16xf32>
    %91 = vector.extract_strided_slice %61 {offsets = [0, 240], sizes = [32, 16], strides = [1, 1]} : vector<32x256xf32> to vector<32x16xf32>
    %92 = arith.maximumf %90, %91 : vector<32x16xf32>
    %c0_43 = arith.constant 0 : index
    %c0_44 = arith.constant 0 : index
    %93 = vector.load %arg16[%c0_43, %c0_44] : memref<32x32xbf16, #tpu.memory_space<vmem>>, vector<32x32xbf16>
    %94 = arith.truncf %92 : vector<32x16xf32> to vector<32x16xbf16>
    %cst_45 = arith.constant dense<0.000000e+00> : vector<32x16xf32>
    %95 = tpu.matmul %93, %94, %cst_45 {dimension_numbers = #tpu.dot_dimension_numbers<[1], [0], [0], [1], [0, 0, 1, 1], [], []>} : vector<32x32xbf16>, vector<32x16xbf16>, vector<32x16xf32> -> vector<32x16xf32>
    %96 = arith.addf %39, %95 : vector<32x16xf32>
    %c0_46 = arith.constant 0 : index
    %c0_47 = arith.constant 0 : index
    %97 = vector.load %arg17[%c0_46, %c0_47] : memref<32x1xf32, #tpu.memory_space<vmem>>, vector<32x1xf32>
    %98 = vector.broadcast %97 : vector<32x1xf32> to vector<32x16xf32>
    %99 = arith.addf %96, %98 : vector<32x16xf32>
    %cst_48 = arith.constant 0.000000e+00 : f32
    %100 = vector.broadcast %cst_48 : f32 to vector<32x16xf32>
    %101 = arith.maximumf %99, %100 : vector<32x16xf32>
    %c0_49 = arith.constant 0 : index
    %c0_50 = arith.constant 0 : index
    %c0_51 = arith.constant 0 : index
    %102 = vector.load %arg18[%c0_49, %c0_50, %c0_51] : memref<1x32x16xf32, #tpu.memory_space<vmem>>, vector<1x32x16xf32>
    %103 = vector.shape_cast %102 : vector<1x32x16xf32> to vector<32x16xf32>
    %104 = vector.shape_cast %101 : vector<32x16xf32> to vector<1x32x16xf32>
    tpu.vector_store %arg18[%c0_49, %c0_50, %c0_51], %104 {strides = array<i32>} : memref<1x32x16xf32, #tpu.memory_space<vmem>>, vector<1x32x16xf32>,
    return
  }
  func.func @transform_0(%arg0: i32) -> (i32, i32, i32) {
    %c0_i32 = arith.constant 0 : i32
    %c0_i32_0 = arith.constant 0 : i32
    %c0_i32_1 = arith.constant 0 : i32
    return %arg0, %c0_i32, %c0_i32_0 : i32, i32, i32
  }
  func.func @transform_1(%arg0: i32) -> (i32, i32, i32) {
    %c0_i32 = arith.constant 0 : i32
    %c0_i32_0 = arith.constant 0 : i32
    %c0_i32_1 = arith.constant 0 : i32
    return %arg0, %c0_i32, %c0_i32_0 : i32, i32, i32
  }
  func.func @transform_2(%arg0: i32) -> (i32, i32) {
    %c0_i32 = arith.constant 0 : i32
    %c0_i32_0 = arith.constant 0 : i32
    %c0_i32_1 = arith.constant 0 : i32
    return %c0_i32, %c0_i32_0 : i32, i32
  }
  func.func @transform_3(%arg0: i32) -> (i32, i32) {
    %c0_i32 = arith.constant 0 : i32
    %c0_i32_0 = arith.constant 0 : i32
    %c0_i32_1 = arith.constant 0 : i32
    return %c0_i32, %c0_i32_0 : i32, i32
  }
  func.func @transform_4(%arg0: i32) -> (i32, i32) {
    %c0_i32 = arith.constant 0 : i32
    %c0_i32_0 = arith.constant 0 : i32
    %c0_i32_1 = arith.constant 0 : i32
    return %c0_i32, %c0_i32_0 : i32, i32
  }
  func.func @transform_5(%arg0: i32) -> (i32, i32) {
    %c0_i32 = arith.constant 0 : i32
    %c0_i32_0 = arith.constant 0 : i32
    %c0_i32_1 = arith.constant 0 : i32
    return %c0_i32, %c0_i32_0 : i32, i32
  }
  func.func @transform_6(%arg0: i32) -> (i32, i32) {
    %c0_i32 = arith.constant 0 : i32
    %c0_i32_0 = arith.constant 0 : i32
    %c0_i32_1 = arith.constant 0 : i32
    return %c0_i32, %c0_i32_0 : i32, i32
  }
  func.func @transform_7(%arg0: i32) -> (i32, i32) {
    %c0_i32 = arith.constant 0 : i32
    %c0_i32_0 = arith.constant 0 : i32
    %c0_i32_1 = arith.constant 0 : i32
    return %c0_i32, %c0_i32_0 : i32, i32
  }
  func.func @transform_8(%arg0: i32) -> (i32, i32, i32) {
    %c0_i32 = arith.constant 0 : i32
    %c0_i32_0 = arith.constant 0 : i32
    %c0_i32_1 = arith.constant 0 : i32
    return %arg0, %c0_i32, %c0_i32_0 : i32, i32, i32
  }
  func.func @transform_9(%arg0: i32) -> (i32, i32, i32) {
    %c0_i32 = arith.constant 0 : i32
    %c0_i32_0 = arith.constant 0 : i32
    %c0_i32_1 = arith.constant 0 : i32
    return %arg0, %c0_i32, %c0_i32_0 : i32, i32, i32
  }
  func.func @transform_10(%arg0: i32) -> (i32, i32) {
    %c0_i32 = arith.constant 0 : i32
    %c0_i32_0 = arith.constant 0 : i32
    %c0_i32_1 = arith.constant 0 : i32
    return %c0_i32, %c0_i32_0 : i32, i32
  }
  func.func @transform_11(%arg0: i32) -> (i32, i32) {
    %c0_i32 = arith.constant 0 : i32
    %c0_i32_0 = arith.constant 0 : i32
    %c0_i32_1 = arith.constant 0 : i32
    return %c0_i32, %c0_i32_0 : i32, i32
  }
  func.func @transform_12(%arg0: i32) -> (i32, i32) {
    %c0_i32 = arith.constant 0 : i32
    %c0_i32_0 = arith.constant 0 : i32
    %c0_i32_1 = arith.constant 0 : i32
    return %c0_i32, %c0_i32_0 : i32, i32
  }
  func.func @transform_13(%arg0: i32) -> (i32, i32) {
    %c0_i32 = arith.constant 0 : i32
    %c0_i32_0 = arith.constant 0 : i32
    %c0_i32_1 = arith.constant 0 : i32
    return %c0_i32, %c0_i32_0 : i32, i32
  }
  func.func @transform_14(%arg0: i32) -> (i32, i32) {
    %c0_i32 = arith.constant 0 : i32
    %c0_i32_0 = arith.constant 0 : i32
    %c0_i32_1 = arith.constant 0 : i32
    return %c0_i32, %c0_i32_0 : i32, i32
  }
  func.func @transform_15(%arg0: i32) -> (i32, i32) {
    %c0_i32 = arith.constant 0 : i32
    %c0_i32_0 = arith.constant 0 : i32
    %c0_i32_1 = arith.constant 0 : i32
    return %c0_i32, %c0_i32_0 : i32, i32
  }
  func.func @transform_16(%arg0: i32) -> (i32, i32) {
    %c0_i32 = arith.constant 0 : i32
    %c0_i32_0 = arith.constant 0 : i32
    %c0_i32_1 = arith.constant 0 : i32
    return %c0_i32, %c0_i32_0 : i32, i32
  }
  func.func @transform_17(%arg0: i32) -> (i32, i32, i32) {
    %c0_i32 = arith.constant 0 : i32
    %c0_i32_0 = arith.constant 0 : i32
    %c0_i32_1 = arith.constant 0 : i32
    return %arg0, %c0_i32, %c0_i32_0 : i32, i32, i32
  }
}

</mosaic_0001>

<bundles_post_ra>
// kernel: pointnet2_sa_msg_forward.2
= control target key start
LH: loop header
LB: loop body
LE: loop exit
PB: predicated region body
PF: predicated region fallthrough
CT: control target
= control target key end

     0   :  { %s533_s18 = smov 0   ;;  %s535_s19 = smov 0   ;;  %s583_s0 = inlined_call_operand.vmem [shape: f32[2,8,64], index: 0, kind: input, shape index: {}]   ;;  %s584_s1 = inlined_call_operand.vmem [shape: bf16[8,8], index: 1, kind: input, shape index: {}]   ;;  %s585_s2 = inlined_call_operand.vmem [shape: f32[8,1], index: 2, kind: input, shape index: {}]   ;;  %s586_s3 = inlined_call_operand.vmem [shape: bf16[3,8], index: 3, kind: input, shape index: {}]   ;;  %s587_s4 = inlined_call_operand.vmem [shape: f32[2,3,64], index: 4, kind: output, shape index: {0}]   ;;  %s588_s5 = inlined_call_operand.vmem [shape: f32[2,1,64], index: 5, kind: output, shape index: {1}]  }
   0x1   :  { %s537_s20 = smov 0  }
   0x2 LB: > { %s28_s21 = sadd.s32 1, %s496_s19  ;;  %p445_p0 = scmp.ge.s32.totalorder %s500_s20, 1  ;;  %s500_s20 = sphi %s537_s20, %s16_s20   ;;  %s496_s19 = sphi %s535_s19, %s590_s19   ;;  %s492_s18 = sphi %s533_s18, %s589_s18  }
   0x3   : > { %p30_p1 = scmp.ge.s32.totalorder %s28_s21, 2  ;;  %p210_p2 = scmp.lt.s32.totalorder %s500_s20, 3 }
   0x5   : > { %s592_s21 = smov (%p30_p1, %s28_s21), 0  ;;  %p211_p3 = pnand %p445_p0, %p210_p2 }
   0x6   : > { %p248_p4 = scmp.lt.s32.totalorder (!%p211_p3), %s492_s18, 1 }
   0x7   : > { %214 = sbr.rel (%p211_p3) target bundleno = 298 (0x12a), region = 36 }
   0xc   : > { %v502_v0 = vmov 0   ;;  %v272_v1 = vld [vmem:[%s585_s2] sm:$0xff]  ;;  %s594_s18 = smov (!%p248_p4, %s492_s18), 1  ;;  %vm282_vm0 = vcmask 1043456   ;;  %vm278_vm1 = vcmask 64512   ;;  %vm321_vm2 = vcmask 518144  }
   0xd   : > { %477 = vset.pattern.permute.xlu0 %v502_v0  ;;  %s446_s24 = sshll.u32 %s594_s18, 3  ;;  %v271_v5 = vld [vmem:[%s584_s1] sm:$0xf]  ;;  %s447_s7 = sshll.u32 %s594_s18, 2  ;;  %vm330_vm3 = vcmask 516096  }
   0xe   : > { %275 = vperm.xlu0 %477, %v272_v1   ;;  %s254_s27 = scalar_lea.vmem %s583_s0, %s446_s24  ;;  %v300_v13 = vld [vmem:[%s586_s3] sm:$0x3]  ;;  %s261_s10 = scalar_lea.vmem %s587_s4, %s447_s7 }
   0xf   : > { %v269_v2 = vld [vmem:[%s254_s27] sm:$0xff]  ;;  %s267_s13 = scalar_lea.vmem %s588_s5, %s594_s18 }
  0x10   : > { %v270_v3 = vpack.c.bf16 %v269_v2, %v269_v2 }
  0x12   : > { %v284_v4 = vsel %vm282_vm0, %v270_v3, 0 }
  0x13   : > { %293 = vmatpush.bf16.msra.mxu0 %v284_v4 }
  0x16   : > { %448 = vmatmul.msk.bf16.vlgmr.msra.gmra.mxu0 %vm278_vm1, %v271_v5 }
  0x80   : > { %v276_v6 = vpop.permute.xlu0 %275 }
  0x93   : > { %v295_v7 = vpop.f32.mrf.mxu0 }
  0x94   : > { %v296_v8 = vadd.f32 %v295_v7, %v276_v6 }
  0x96   : > { %v299_v9 = vmax.f32 %v296_v8, 0.0 }
  0x98   : > { %v301_v10 = vpack.c.bf16 %v299_v9, %v299_v9 }
  0x9a   : > { %v306_v11 = vsel %vm282_vm0, %v301_v10, 0 }
  0x9b   : > { %v297_v12 = vpop.f32.mrf.mxu0  ;;  %315 = vmatpush.bf16.msra.mxu1 %v306_v11 }
  0x9e   : > { %449 = vmatmul.msk.bf16.vlgmr.msra.gmra.mxu1 %vm278_vm1, %v300_v13 }
 0x11b   : > { %v317_v14 = vpop.f32.mrf.mxu1 }
 0x11c   : > { %322 = vst.msk [vmem:[%s261_s10] sm:$0x7] %vm321_vm2, %v317_v14  ;;  %v323_v15 = vsel %vm321_vm2, %v317_v14, -inf }
 0x11d   : > { %v324_v16 = vrot.slane %v323_v15, 4 }
 0x11f   : > { %v325_v17 = vmax.f32 %v323_v15, %v324_v16 }
 0x121   : > { %v326_v18 = vrot.slane %v325_v17, 2 }
 0x123   : > { %v327_v19 = vmax.f32 %v325_v17, %v326_v18  ;;  %v319_v20 = vpop.f32.mrf.mxu1 }
 0x125   : > { %v328_v21 = vrot.slane %v327_v19, 1 }
 0x127   : > { %v329_v22 = vmax.f32 %v327_v19, %v328_v21 }
 0x129   : > { %331 = vst.msk [vmem:[%s267_s13] sm:$0x1] %vm330_vm3, %v329_v22 }
 0x12a PF: > { %s16_s20 = sadd.s32 1, %s500_s20   ;;  %s589_s18 = smov %s496_s19 }
 0x12b   : > { %p13_p5 = scmp.ge.s32.totalorder %s16_s20, 4   ;;  %s590_s19 = smov %s592_s21 }
 0x12d   :  { %15 = sbr.rel (!%p13_p5) target bundleno = 2 (0x2), region = 78 }

// kernel: tile.19
= control target key start
LH: loop header
LB: loop body
LE: loop exit
PB: predicated region body
PF: predicated region fallthrough
CT: control target
= control target key end

     0   :  { %vm27_vm0 = vcmask 1043458   ;;  %vm32_vm1 = vcmask 1045508   ;;  %vm37_vm2 = vcmask 1047558   ;;  %s65_s6 = smov 3  ;;  %s68_s7 = smov 12  ;;  %vm4_vm3 = vcmask 1047556   ;;  %s637_s0 = inlined_call_operand.vmem [shape: f32[2,3,16,16], index: 0, kind: input, shape index: {}]   ;;  %s638_s1 = inlined_call_operand.vmem [shape: f32[2,3,256], index: 1, kind: output, shape index: {}]  }
   0x1   :  { %v365_v0 = vld [vmem:[%s637_s0 + $0x6] ss:$16 sm:%s65_s6]   ;;  %v366_v1 = vld [vmem:[%s637_s0 - $0x12] ss:$16 sm:%s68_s7]   ;;  %s73_s12 = smov 48  ;;  %s78_s13 = smov 192 }
   0x2   :  { %v71_v2 = vsel %vm27_vm0, %v366_v1, %v365_v0  ;;  %v367_v3 = vld [vmem:[%s637_s0 - $0x1a] ss:$16 sm:%s73_s12]   ;;  %v368_v4 = vld [vmem:[%s637_s0 - $0x32] ss:$16 sm:%s78_s13]   ;;  %s22_s18 = smov 3  ;;  %s25_s21 = smov 12 }
   0x3   :  { %v76_v5 = vsel %vm32_vm1, %v367_v3, %v71_v2  ;;  %v359_v6 = vld [vmem:[%s637_s0 + $0x7] ss:$16 sm:%s22_s18]   ;;  %s30_s22 = smov 48  ;;  %v360_v8 = vld [vmem:[%s637_s0 - $0x11] ss:$16 sm:%s25_s21]   ;;  %s35_s27 = smov 192 }
   0x4   :  { %v81_v7 = vsel %vm37_vm2, %v368_v4, %v76_v5  ;;  %v361_v9 = vld [vmem:[%s637_s0 - $0x19] ss:$16 sm:%s30_s22]   ;;  %s413_s28 = smov 96   ;;  %v28_v10 = vsel %vm27_vm0, %v360_v8, %v359_v6  ;;  %v362_v11 = vld [vmem:[%s637_s0 - $0x31] ss:$16 sm:%s35_s27]   ;;  %s93_s2 = smov 3 }
   0x5   :  { %82 = vrot.lane.b32.xlu1 %v81_v7, %s413_s28  ;;  %s96_s3 = smov 12  ;;  %v33_v12 = vsel %vm32_vm1, %v361_v9, %v28_v10  ;;  %v369_v14 = vld [vmem:[%s637_s0 + $0x46] ss:$16 sm:%s93_s2]   ;;  %s50_s8 = smov 3  ;;  %vm6_vm4 = vcmask 130048   ;;  %vm41_vm5 = vcmask 1048448  }
   0x6   :  { %v38_v13 = vsel %vm37_vm2, %v362_v11, %v33_v12  ;;  %v370_v15 = vld [vmem:[%s637_s0 + $0x2e] ss:$16 sm:%s96_s3]   ;;  %s53_s9 = smov 12  ;;  %s414_s10 = smov 112   ;;  %v363_v17 = vld [vmem:[%s637_s0 + $0x47] ss:$16 sm:%s50_s8]  }
   0x7   :  { %39 = vrot.lane.b32.xlu0 %v38_v13, %s414_s10  ;;  %s151_s11 = smov 3  ;;  %s154_s12 = smov 12  ;;  %v99_v16 = vsel %vm27_vm0, %v370_v15, %v369_v14  ;;  %v364_v18 = vld [vmem:[%s637_s0 + $0x2f] ss:$16 sm:%s53_s9]   ;;  %vm84_vm6 = vcmask 917248   ;;  %vm127_vm7 = vcmask 786048  }
   0x8   :  { %s179_s17 = smov 3  ;;  %s182_s18 = smov 12  ;;  %v377_v19 = vld [vmem:[%s637_s0 + $0x4] ss:$16 sm:%s151_s11]   ;;  %v378_v20 = vld [vmem:[%s637_s0 - $0x14] ss:$16 sm:%s154_s12]   ;;  %v56_v21 = vsel %vm27_vm0, %v364_v18, %v363_v17 }
   0x9   :  { %s159_s19 = smov 48  ;;  %s237_s24 = smov 3  ;;  %v381_v22 = vld [vmem:[%s637_s0 + $0x44] ss:$16 sm:%s179_s17]   ;;  %v382_v23 = vld [vmem:[%s637_s0 + $0x2c] ss:$16 sm:%s182_s18]   ;;  %v157_v25 = vsel %vm27_vm0, %v378_v20, %v377_v19 }
   0xa   :  { %s240_s25 = smov 12  ;;  %v379_v24 = vld [vmem:[%s637_s0 - $0x1c] ss:$16 sm:%s159_s19]   ;;  %s164_s3 = smov 192  ;;  %v389_v26 = vld [vmem:[%s637_s0 + $0x2] ss:$16 sm:%s237_s24]   ;;  %v185_v33 = vsel %vm27_vm0, %v382_v23, %v381_v22 }
   0xb   :  { %s108_s4 = smov 3  ;;  %v390_v27 = vld [vmem:[%s637_s0 - $0x16] ss:$16 sm:%s240_s25]   ;;  %s111_s12 = smov 12  ;;  %v162_v34 = vsel %vm32_vm1, %v379_v24, %v157_v25  ;;  %v380_v35 = vld [vmem:[%s637_s0 - $0x34] ss:$16 sm:%s164_s3]  }
   0xc   :  { %v371_v28 = vld [vmem:[%s637_s0 + $0x5] ss:$16 sm:%s108_s4]   ;;  %s116_s13 = smov 48  ;;  %v372_v29 = vld [vmem:[%s637_s0 - $0x13] ss:$16 sm:%s111_s12]   ;;  %s121_s15 = smov 192  ;;  %v243_v38 = vsel %vm27_vm0, %v390_v27, %v389_v26  ;;  %v167_v40 = vsel %vm37_vm2, %v380_v35, %v162_v34 }
   0xd   :  { %100 = vrot.lane.b32.xlu1 %v99_v16, %s413_s28  ;;  %s245_s16 = smov 48  ;;  %v114_v30 = vsel %vm27_vm0, %v372_v29, %v371_v28  ;;  %v373_v31 = vld [vmem:[%s637_s0 - $0x1b] ss:$16 sm:%s116_s13]   ;;  %s250_s23 = smov 192  ;;  %vm170_vm8 = vcmask 654848   ;;  %vm213_vm9 = vcmask 523648  }
   0xe   :  { %v374_v32 = vld [vmem:[%s637_s0 - $0x33] ss:$16 sm:%s121_s15]   ;;  %v119_v36 = vsel %vm32_vm1, %v373_v31, %v114_v30  ;;  %v391_v39 = vld [vmem:[%s637_s0 - $0x1e] ss:$16 sm:%s245_s16]   ;;  %s415_s26 = smov 80   ;;  %s136_s27 = smov 3 }
   0xf   :  { %57 = vrot.lane.b32.xlu0 %v56_v21, %s414_s10  ;;  %v124_v37 = vsel %vm37_vm2, %v374_v32, %v119_v36  ;;  %s416_s28 = smov 64   ;;  %s139_s29 = smov 12  ;;  %v392_v41 = vld [vmem:[%s637_s0 - $0x36] ss:$16 sm:%s250_s23]   ;;  %v248_v43 = vsel %vm32_vm1, %v391_v39, %v243_v38  ;;  %vm256_vm10 = vcmask 392448   ;;  %vm299_vm11 = vcmask 261248  }
  0x10   :  { %125 = vrot.lane.b32.xlu2 %v124_v37, %s415_s26  ;;  %s194_s30 = smov 3  ;;  %v375_v42 = vld [vmem:[%s637_s0 + $0x45] ss:$16 sm:%s136_s27]   ;;  %s197_s6 = smov 12  ;;  %v253_v48 = vsel %vm37_vm2, %v392_v41, %v248_v43 }
  0x11   :  { %s222_s7 = smov 3  ;;  %s225_s8 = smov 12  ;;  %v376_v44 = vld [vmem:[%s637_s0 + $0x2d] ss:$16 sm:%s139_s29]   ;;  %v383_v45 = vld [vmem:[%s637_s0 + $0x3] ss:$16 sm:%s194_s30]  }
  0x12   :  { %s280_s10 = smov 3  ;;  %v384_v46 = vld [vmem:[%s637_s0 - $0x15] ss:$16 sm:%s197_s6]   ;;  %s202_s16 = smov 48  ;;  %v142_v47 = vsel %vm27_vm0, %v376_v44, %v375_v42  ;;  %v387_v49 = vld [vmem:[%s637_s0 + $0x43] ss:$16 sm:%s222_s7]  }
  0x13   :  { %s283_s17 = smov 12  ;;  %v388_v50 = vld [vmem:[%s637_s0 + $0x2b] ss:$16 sm:%s225_s8]   ;;  %s308_s22 = smov 3  ;;  %v395_v51 = vld [vmem:[%s637_s0 + $0x1] ss:$16 sm:%s280_s10]   ;;  %v200_v52 = vsel %vm27_vm0, %v384_v46, %v383_v45 }
  0x14   :  { %v385_v53 = vld [vmem:[%s637_s0 - $0x1d] ss:$16 sm:%s202_s16]   ;;  %s311_s29 = smov 12  ;;  %v396_v54 = vld [vmem:[%s637_s0 - $0x17] ss:$16 sm:%s283_s17]   ;;  %s288_s3 = smov 48  ;;  %v228_v55 = vsel %vm27_vm0, %v388_v50, %v387_v49 }
  0x15   :  { %186 = vrot.lane.b32.xlu1 %v185_v33, %s416_s28  ;;  %v399_v56 = vld [vmem:[%s637_s0 + $0x41] ss:$16 sm:%s308_s22]   ;;  %v205_v57 = vsel %vm32_vm1, %v385_v53, %v200_v52  ;;  %v286_v60 = vsel %vm27_vm0, %v396_v54, %v395_v51  ;;  %s293_s13 = smov 192  ;;  %s418_s10 = smov 48  }
  0x16   :  { %v400_v59 = vld [vmem:[%s637_s0 + $0x29] ss:$16 sm:%s311_s29]   ;;  %v397_v61 = vld [vmem:[%s637_s0 - $0x1f] ss:$16 sm:%s288_s3]   ;;  %s265_s16 = smov 3  ;;  %s268_s17 = smov 12 }
  0x17   :  { %168 = vrot.lane.b32.xlu0 %v167_v40, %s416_s28  ;;  %s207_s28 = smov 192  ;;  %v314_v63 = vsel %vm27_vm0, %v400_v59, %v399_v56  ;;  %v291_v0 = vsel %vm32_vm1, %v397_v61, %v286_v60  ;;  %v398_v1 = vld [vmem:[%s637_s0 - $0x37] ss:$16 sm:%s293_s13]   ;;  %s419_s18 = smov 16  }
  0x18   :  { %143 = vrot.lane.b32.xlu2 %v142_v47, %s415_s26  ;;  %s417_s26 = smov 32   ;;  %v386_v58 = vld [vmem:[%s637_s0 - $0x35] ss:$16 sm:%s207_s28]   ;;  %v296_v2 = vsel %vm37_vm2, %v398_v1, %v291_v0  ;;  %v2_v6 = vld [vmem:[%s637_s0] ss:$8 sm:$0xf]  }
  0x19   :  { %v210_v62 = vsel %vm37_vm2, %v386_v58, %v205_v57  ;;  %v393_v3 = vld [vmem:[%s637_s0 + $0x42] ss:$16 sm:%s265_s16]   ;;  %v394_v4 = vld [vmem:[%s637_s0 + $0x2a] ss:$16 sm:%s268_s17]  }
  0x1a   :  { %v271_v5 = vsel %vm27_vm0, %v394_v4, %v393_v3  ;;  %v3_v7 = vld [vmem:[%s637_s0] ss:$8 sm:$0xf0]  }
  0x1b   :  { %v5_v8 = vsel %vm4_vm3, %v3_v7, %v2_v6  ;;  %v358_v9 = vld [vmem:[%s637_s0 + $0x40] ss:$8 sm:$0xf]  }
  0x1c   :  { %7 = vst.msk [vmem:[#allocation0] ss:$8 sm:$0x3] %vm6_vm4, %v5_v8  }
  0x1d   :  { %254 = vrot.lane.b32.xlu1 %v253_v48, %s417_s26  ;;  %9 = vst.msk [vmem:[#allocation0 - $0xf] ss:$8 sm:$0xc] %vm6_vm4, %v5_v8  }
  0x1e   :  { %11 = vst.msk [vmem:[#allocation0 - $0x10] ss:$8 sm:$0x30] %vm6_vm4, %v5_v8  }
  0x1f   :  { %229 = vrot.lane.b32.xlu0 %v228_v55, %s418_s10  ;;  %13 = vst.msk [vmem:[#allocation0 - $0x1f] ss:$8 sm:$0xc0] %vm6_vm4, %v5_v8  }
  0x20   :  { %211 = vrot.lane.b32.xlu2 %v210_v62, %s418_s10  ;;  %18 = vst.msk [vmem:[#allocation0 + $0x20] ss:$8 sm:$0x3] %vm6_vm4, %v358_v9  }
  0x21   :  { %20 = vst.msk [vmem:[#allocation0 + $0x11] ss:$8 sm:$0xc] %vm6_vm4, %v358_v9  }
  0x25   :  { %315 = vrot.lane.b32.xlu1 %v314_v63, %s419_s18 }
  0x27   :  { %297 = vrot.lane.b32.xlu0 %v296_v2, %s419_s18 }
  0x28   :  { %272 = vrot.lane.b32.xlu2 %v271_v5, %s417_s26 }
  0x6a   :  { %v126_v10 = vpop.permute.xlu2 %125  }
  0x72   :  { %v144_v11 = vpop.permute.xlu2 %143  }
  0x77   :  { %v83_v12 = vpop.permute.xlu1 %82  }
  0x79   :  { %v40_v13 = vpop.permute.xlu0 %39  }
  0x7a   :  { %42 = vst.msk [vmem:[#allocation0] sm:$0x3] %vm41_vm5, %v40_v13   ;;  %v212_v14 = vpop.permute.xlu2 %211  }
  0x7b   :  { %44 = vst.msk [vmem:[#allocation0 + $0x6] sm:$0xc] %vm41_vm5, %v40_v13  }
  0x7c   :  { %46 = vst.msk [vmem:[#allocation0 + $0xc] sm:$0x30] %vm41_vm5, %v40_v13  }
  0x7d   :  { %48 = vst.msk [vmem:[#allocation0 + $0x12] sm:$0xc0] %vm41_vm5, %v40_v13  }
  0x7e   :  { %85 = vst.msk [vmem:[#allocation0] sm:$0x3] %vm84_vm6, %v83_v12  }
  0x7f   :  { %v101_v15 = vpop.permute.xlu1 %100   ;;  %87 = vst.msk [vmem:[#allocation0 + $0x6] sm:$0xc] %vm84_vm6, %v83_v12  }
  0x80   :  { %89 = vst.msk [vmem:[#allocation0 + $0xc] sm:$0x30] %vm84_vm6, %v83_v12  }
  0x81   :  { %91 = vst.msk [vmem:[#allocation0 + $0x12] sm:$0xc0] %vm84_vm6, %v83_v12   ;;  %v58_v16 = vpop.permute.xlu0 %57  }
  0x82   :  { %128 = vst.msk [vmem:[#allocation0] sm:$0x3] %vm127_vm7, %v126_v10   ;;  %v273_v17 = vpop.permute.xlu2 %272  }
  0x83   :  { %130 = vst.msk [vmem:[#allocation0 + $0x6] sm:$0xc] %vm127_vm7, %v126_v10  }
  0x84   :  { %132 = vst.msk [vmem:[#allocation0 + $0xc] sm:$0x30] %vm127_vm7, %v126_v10  }
  0x85   :  { %134 = vst.msk [vmem:[#allocation0 + $0x12] sm:$0xc0] %vm127_vm7, %v126_v10  }
  0x86   :  { %61 = vst.msk [vmem:[#allocation0 + $0x20] sm:$0x3] %vm41_vm5, %v58_v16  }
  0x87   :  { %v187_v18 = vpop.permute.xlu1 %186   ;;  %63 = vst.msk [vmem:[#allocation0 + $0x26] sm:$0xc] %vm41_vm5, %v58_v16  }
  0x88   :  { %104 = vst.msk [vmem:[#allocation0 + $0x20] sm:$0x3] %vm84_vm6, %v101_v15  }
  0x89   :  { %106 = vst.msk [vmem:[#allocation0 + $0x26] sm:$0xc] %vm84_vm6, %v101_v15   ;;  %v169_v19 = vpop.permute.xlu0 %168  }
  0x8a   :  { %147 = vst.msk [vmem:[#allocation0 + $0x20] sm:$0x3] %vm127_vm7, %v144_v11  }
  0x8b   :  { %149 = vst.msk [vmem:[#allocation0 + $0x26] sm:$0xc] %vm127_vm7, %v144_v11  }
  0x8c   :  { %190 = vst.msk [vmem:[#allocation0 + $0x20] sm:$0x3] %vm170_vm8, %v187_v18  }
  0x8d   :  { %192 = vst.msk [vmem:[#allocation0 + $0x26] sm:$0xc] %vm170_vm8, %v187_v18  }
  0x8e   :  { %171 = vst.msk [vmem:[#allocation0] sm:$0x3] %vm170_vm8, %v169_v19  }
  0x8f   :  { %v255_v20 = vpop.permute.xlu1 %254   ;;  %173 = vst.msk [vmem:[#allocation0 + $0x6] sm:$0xc] %vm170_vm8, %v169_v19  }
  0x90   :  { %175 = vst.msk [vmem:[#allocation0 + $0xc] sm:$0x30] %vm170_vm8, %v169_v19  }
  0x91   :  { %177 = vst.msk [vmem:[#allocation0 + $0x12] sm:$0xc0] %vm170_vm8, %v169_v19   ;;  %v230_v21 = vpop.permute.xlu0 %229  }
  0x92   :  { %214 = vst.msk [vmem:[#allocation0] sm:$0x3] %vm213_vm9, %v212_v14  }
  0x93   :  { %216 = vst.msk [vmem:[#allocation0 + $0x6] sm:$0xc] %vm213_vm9, %v212_v14  }
  0x94   :  { %218 = vst.msk [vmem:[#allocation0 + $0xc] sm:$0x30] %vm213_vm9, %v212_v14  }
  0x95   :  { %220 = vst.msk [vmem:[#allocation0 + $0x12] sm:$0xc0] %vm213_vm9, %v212_v14  }
  0x96   :  { %257 = vst.msk [vmem:[#allocation0] sm:$0x3] %vm256_vm10, %v255_v20  }
  0x97   :  { %v316_v22 = vpop.permute.xlu1 %315   ;;  %259 = vst.msk [vmem:[#allocation0 + $0x6] sm:$0xc] %vm256_vm10, %v255_v20  }
  0x98   :  { %261 = vst.msk [vmem:[#allocation0 + $0xc] sm:$0x30] %vm256_vm10, %v255_v20  }
  0x99   :  { %263 = vst.msk [vmem:[#allocation0 + $0x12] sm:$0xc0] %vm256_vm10, %v255_v20   ;;  %v298_v23 = vpop.permute.xlu0 %297  }
  0x9a   :  { %233 = vst.msk [vmem:[#allocation0 + $0x20] sm:$0x3] %vm213_vm9, %v230_v21  }
  0x9b   :  { %235 = vst.msk [vmem:[#allocation0 + $0x26] sm:$0xc] %vm213_vm9, %v230_v21  }
  0x9c   :  { %276 = vst.msk [vmem:[#allocation0 + $0x20] sm:$0x3] %vm256_vm10, %v273_v17  }
  0x9d   :  { %278 = vst.msk [vmem:[#allocation0 + $0x26] sm:$0xc] %vm256_vm10, %v273_v17  }
  0x9e   :  { %319 = vst.msk [vmem:[#allocation0 + $0x20] sm:$0x3] %vm299_vm11, %v316_v22  }
  0x9f   :  { %321 = vst.msk [vmem:[#allocation0 + $0x26] sm:$0xc] %vm299_vm11, %v316_v22  }
  0xa0   :  { %300 = vst.msk [vmem:[#allocation0] sm:$0x3] %vm299_vm11, %v298_v23  }
  0xa1   :  { %302 = vst.msk [vmem:[#allocation0 + $0x6] sm:$0xc] %vm299_vm11, %v298_v23  }
  0xa2   :  { %304 = vst.msk [vmem:[#allocation0 + $0xc] sm:$0x30] %vm299_vm11, %v298_v23  }
  0xa3   :  { %306 = vst.msk [vmem:[#allocation0 + $0x12] sm:$0xc0] %vm299_vm11, %v298_v23  }
  0xa5   :  { %v347_v24 = vld [vmem:[#allocation0 + $0x20] sm:$0x3] }
  0xa6   :  { %404 = vst [vmem:[%s638_s1 + $0x8] sm:$0x3] %v347_v24  ;;  %v353_v25 = vld [vmem:[#allocation0 + $0x28] sm:$0x3] }
  0xa7   :  { %405 = vst [vmem:[%s638_s1 + $0xa] sm:$0x3] %v353_v25  ;;  %v324_v26 = vld [vmem:[#allocation0] sm:$0x3] }
  0xa8   :  { %327 = vst [vmem:[%s638_s1] sm:$0x3] %v324_v26  ;;  %v329_v27 = vld [vmem:[#allocation0 + $0x8] sm:$0x3] }
  0xa9   :  { %401 = vst [vmem:[%s638_s1 + $0x2] sm:$0x3] %v329_v27  ;;  %v335_v28 = vld [vmem:[#allocation0 + $0x10] sm:$0x3] }
  0xaa   :  { %402 = vst [vmem:[%s638_s1 + $0x4] sm:$0x3] %v335_v28  ;;  %v341_v29 = vld [vmem:[#allocation0 + $0x18] sm:$0x3] }
  0xab   :  { %403 = vst [vmem:[%s638_s1 + $0x6] sm:$0x3] %v341_v29 }

// kernel: tile.14
= control target key start
LH: loop header
LB: loop body
LE: loop exit
PB: predicated region body
PF: predicated region fallthrough
CT: control target
= control target key end

     0   :  { %vm5_vm0 = vcmask 1045508   ;;  %s16_s8 = smov 48  ;;  %s46_s13 = smov 48  ;;  %vm7_vm1 = vcmask 130048   ;;  %vm22_vm2 = vcmask 1048448   ;;  %vm37_vm3 = vcmask 917248   ;;  %s241_s0 = inlined_call_operand.vmem [shape: f32[2,3,8,16], index: 0, kind: input, shape index: {}]   ;;  %s242_s1 = inlined_call_operand.vmem [shape: f32[2,3,128], index: 1, kind: output, shape index: {}]  }
   0x1   :  { %v136_v0 = vld [vmem:[%s241_s0 + $0x7] ss:$8 sm:$0xf]   ;;  %v140_v2 = vld [vmem:[%s241_s0 + $0x5] ss:$8 sm:$0xf]  }
   0x2   :  { %v137_v1 = vld [vmem:[%s241_s0 + $0x7] ss:$8 sm:%s16_s8]   ;;  %v141_v4 = vld [vmem:[%s241_s0 + $0x5] ss:$8 sm:%s46_s13]   ;;  %s159_s16 = smov 112   ;;  %s31_s17 = smov 48 }
   0x3   :  { %v19_v3 = vsel %vm5_vm0, %v137_v1, %v136_v0  ;;  %v49_v5 = vsel %vm5_vm0, %v141_v4, %v140_v2  ;;  %s160_s18 = smov 80   ;;  %v138_v6 = vld [vmem:[%s241_s0 + $0x6] ss:$8 sm:$0xf]   ;;  %s61_s21 = smov 48  ;;  %vm52_vm4 = vcmask 786048  }
   0x4   :  { %20 = vrot.lane.b32.xlu0 %v19_v3, %s159_s16  ;;  %50 = vrot.lane.b32.xlu1 %v49_v5, %s160_s18  ;;  %v139_v7 = vld [vmem:[%s241_s0 + $0x6] ss:$8 sm:%s31_s17]   ;;  %s76_s30 = smov 48  ;;  %s91_s4 = smov 48  ;;  %vm67_vm5 = vcmask 654848   ;;  %vm82_vm6 = vcmask 523648  }
   0x5   :  { %v142_v8 = vld [vmem:[%s241_s0 + $0x4] ss:$8 sm:$0xf]   ;;  %v144_v10 = vld [vmem:[%s241_s0 + $0x3] ss:$8 sm:$0xf]   ;;  %v34_v11 = vsel %vm5_vm0, %v139_v7, %v138_v6 }
   0x6   :  { %v143_v9 = vld [vmem:[%s241_s0 + $0x4] ss:$8 sm:%s61_s21]   ;;  %v145_v12 = vld [vmem:[%s241_s0 + $0x3] ss:$8 sm:%s76_s30]   ;;  %s106_s5 = smov 48  ;;  %s161_s6 = smov 48  }
   0x7   :  { %v64_v13 = vsel %vm5_vm0, %v143_v9, %v142_v8  ;;  %v79_v14 = vsel %vm5_vm0, %v145_v12, %v144_v10  ;;  %s162_s7 = smov 96   ;;  %s163_s8 = smov 64   ;;  %v146_v15 = vld [vmem:[%s241_s0 + $0x2] ss:$8 sm:$0xf]   ;;  %vm97_vm7 = vcmask 392448  }
   0x8   :  { %80 = vrot.lane.b32.xlu2 %v79_v14, %s161_s6  ;;  %v147_v16 = vld [vmem:[%s241_s0 + $0x2] ss:$8 sm:%s91_s4]   ;;  %v148_v17 = vld [vmem:[%s241_s0 + $0x1] ss:$8 sm:$0xf]   ;;  %s164_s17 = smov 32  }
   0x9   :  { %v149_v18 = vld [vmem:[%s241_s0 + $0x1] ss:$8 sm:%s106_s5]   ;;  %v94_v19 = vsel %vm5_vm0, %v147_v16, %v146_v15  ;;  %s165_s18 = smov 16   ;;  %s3_s19 = smov 48  ;;  %vm112_vm8 = vcmask 261248  }
   0xa   :  { %v109_v20 = vsel %vm5_vm0, %v149_v18, %v148_v17  ;;  %v2_v21 = vld [vmem:[%s241_s0] ss:$8 sm:$0xf]  }
   0xb   :  { %v4_v22 = vld [vmem:[%s241_s0] ss:$8 sm:%s3_s19]  }
   0xc   :  { %35 = vrot.lane.b32.xlu0 %v34_v11, %s162_s7  ;;  %65 = vrot.lane.b32.xlu1 %v64_v13, %s163_s8  ;;  %v6_v23 = vsel %vm5_vm0, %v4_v22, %v2_v21 }
   0xd   :  { %8 = vst.msk [vmem:[#allocation0] sm:$0x3] %vm7_vm1, %v6_v23  }
   0xe   :  { %10 = vst.msk [vmem:[#allocation0 + $0x6] sm:$0xc] %vm7_vm1, %v6_v23  }
   0xf   :  { %12 = vst.msk [vmem:[#allocation0 + $0xc] sm:$0x30] %vm7_vm1, %v6_v23  }
  0x10   :  { %95 = vrot.lane.b32.xlu2 %v94_v19, %s164_s17 }
  0x14   :  { %110 = vrot.lane.b32.xlu0 %v109_v20, %s165_s18 }
  0x62   :  { %v81_v24 = vpop.permute.xlu2 %80  }
  0x6a   :  { %v96_v25 = vpop.permute.xlu2 %95  }
  0x76   :  { %v21_v26 = vpop.permute.xlu0 %20   ;;  %v51_v27 = vpop.permute.xlu1 %50  }
  0x77   :  { %23 = vst.msk [vmem:[#allocation0] sm:$0x3] %vm22_vm2, %v21_v26  }
  0x78   :  { %25 = vst.msk [vmem:[#allocation0 + $0x6] sm:$0xc] %vm22_vm2, %v21_v26  }
  0x79   :  { %27 = vst.msk [vmem:[#allocation0 + $0xc] sm:$0x30] %vm22_vm2, %v21_v26  }
  0x7e   :  { %v36_v28 = vpop.permute.xlu0 %35   ;;  %v66_v29 = vpop.permute.xlu1 %65  }
  0x7f   :  { %38 = vst.msk [vmem:[#allocation0] sm:$0x3] %vm37_vm3, %v36_v28  }
  0x80   :  { %40 = vst.msk [vmem:[#allocation0 + $0x6] sm:$0xc] %vm37_vm3, %v36_v28  }
  0x81   :  { %42 = vst.msk [vmem:[#allocation0 + $0xc] sm:$0x30] %vm37_vm3, %v36_v28  }
  0x82   :  { %53 = vst.msk [vmem:[#allocation0] sm:$0x3] %vm52_vm4, %v51_v27  }
  0x83   :  { %55 = vst.msk [vmem:[#allocation0 + $0x6] sm:$0xc] %vm52_vm4, %v51_v27  }
  0x84   :  { %57 = vst.msk [vmem:[#allocation0 + $0xc] sm:$0x30] %vm52_vm4, %v51_v27  }
  0x85   :  { %68 = vst.msk [vmem:[#allocation0] sm:$0x3] %vm67_vm5, %v66_v29  }
  0x86   :  { %70 = vst.msk [vmem:[#allocation0 + $0x6] sm:$0xc] %vm67_vm5, %v66_v29   ;;  %v111_v30 = vpop.permute.xlu0 %110  }
  0x87   :  { %72 = vst.msk [vmem:[#allocation0 + $0xc] sm:$0x30] %vm67_vm5, %v66_v29  }
  0x88   :  { %83 = vst.msk [vmem:[#allocation0] sm:$0x3] %vm82_vm6, %v81_v24  }
  0x89   :  { %85 = vst.msk [vmem:[#allocation0 + $0x6] sm:$0xc] %vm82_vm6, %v81_v24  }
  0x8a   :  { %87 = vst.msk [vmem:[#allocation0 + $0xc] sm:$0x30] %vm82_vm6, %v81_v24  }
  0x8b   :  { %98 = vst.msk [vmem:[#allocation0] sm:$0x3] %vm97_vm7, %v96_v25  }
  0x8c   :  { %100 = vst.msk [vmem:[#allocation0 + $0x6] sm:$0xc] %vm97_vm7, %v96_v25  }
  0x8d   :  { %102 = vst.msk [vmem:[#allocation0 + $0xc] sm:$0x30] %vm97_vm7, %v96_v25  }
  0x8e   :  { %113 = vst.msk [vmem:[#allocation0] sm:$0x3] %vm112_vm8, %v111_v30  }
  0x8f   :  { %115 = vst.msk [vmem:[#allocation0 + $0x6] sm:$0xc] %vm112_vm8, %v111_v30  }
  0x90   :  { %117 = vst.msk [vmem:[#allocation0 + $0xc] sm:$0x30] %vm112_vm8, %v111_v30  }
  0x95   :  { %v120_v31 = vld [vmem:[#allocation0] sm:$0x3] }
  0x96   :  { %123 = vst [vmem:[%s242_s1] sm:$0x3] %v120_v31  ;;  %v125_v32 = vld [vmem:[#allocation0 + $0x8] sm:$0x3] }
  0x97   :  { %150 = vst [vmem:[%s242_s1 + $0x2] sm:$0x3] %v125_v32  ;;  %v131_v33 = vld [vmem:[#allocation0 + $0x10] sm:$0x3] }
  0x98   :  { %151 = vst [vmem:[%s242_s1 + $0x4] sm:$0x3] %v131_v33 }

// kernel: pointnet2_sa_msg_forward.3
= control target key start
LH: loop header
LB: loop body
LE: loop exit
PB: predicated region body
PF: predicated region fallthrough
CT: control target
= control target key end

     0   :  { %s1825_s24 = smov 0   ;;  %s2114_s0 = inlined_call_operand.vmem [shape: bf16[2,3,128], index: 0, kind: input, shape index: {}]   ;;  %s2115_s1 = inlined_call_operand.vmem [shape: bf16[2,8,128], index: 1, kind: input, shape index: {}]   ;;  %s2116_s2 = inlined_call_operand.vmem [shape: bf16[16,3], index: 2, kind: input, shape index: {}]   ;;  %s2117_s3 = inlined_call_operand.vmem [shape: bf16[16,8], index: 3, kind: input, shape index: {}]   ;;  %s2118_s4 = inlined_call_operand.vmem [shape: f32[16,1], index: 4, kind: input, shape index: {}]   ;;  %s2119_s5 = inlined_call_operand.vmem [shape: bf16[16,16], index: 5, kind: input, shape index: {}]   ;;  %s2120_s6 = inlined_call_operand.vmem [shape: f32[16,1], index: 6, kind: input, shape index: {}]   ;;  %s2121_s7 = inlined_call_operand.vmem [shape: bf16[32,16], index: 7, kind: input, shape index: {}]   ;;  %s2122_s8 = inlined_call_operand.vmem [shape: bf16[2,3,256], index: 8, kind: input, shape index: {}]   ;;  %s2123_s9 = inlined_call_operand.vmem [shape: bf16[2,8,256], index: 9, kind: input, shape index: {}]   ;;  %s2124_s10 = inlined_call_operand.vmem [shape: bf16[16,3], index: 10, kind: input, shape index: {}]   ;;  %s2125_s11 = inlined_call_operand.vmem [shape: bf16[16,8], index: 11, kind: input, shape index: {}]   ;;  %s2126_s12 = inlined_call_operand.vmem [shape: f32[16,1], index: 12, kind: input, shape index: {}]   ;;  %s2127_s13 = inlined_call_operand.vmem [shape: bf16[32,16], index: 13, kind: input, shape index: {}]   ;;  %s2128_s14 = inlined_call_operand.vmem [shape: f32[32,1], index: 14, kind: input, shape index: {}]   ;;  %s2129_s15 = inlined_call_operand.vmem [shape: bf16[32,32], index: 15, kind: input, shape index: {}]   ;;  %s2130_s16 = inlined_call_operand.vmem [shape: f32[32,1], index: 16, kind: input, shape index: {}]   ;;  %s2131_s17 = inlined_call_operand.vmem [shape: f32[2,32,16], index: 17, kind: output, shape index: {}]  }
   0x1   :  { %2134 = sst [smem:[#allocation3_spill]] %s2114_s0 }
   0x2   :  { %2135 = sst [smem:[#allocation4_spill]] %s2115_s1 }
   0x3   :  { %2136 = sst [smem:[#allocation5_spill]] %s2129_s15 }
   0x4   :  { %2137 = sst [smem:[#allocation6_spill]] %s2131_s17 }
   0x5 LB: > { %2138 = sst [smem:[#allocation2_spill]] %s1724_s24  ;;  %s1435_s25 = sadd.s32 4294967295, %s1724_s24   ;;  %s1724_s24 = sphi %s1825_s24, %s27_s24  }
   0x6   : > { %p1439_p0 = scmp.ge.s32.totalorder %s1724_s24, 1  ;;  %p515_p1 = scmp.lt.s32.totalorder %s1724_s24, 3 }
   0x8   : > { %p516_p2 = pnand %p1439_p0, %p515_p1 }
   0x9   : > { %p580_p3 = scmp.lt.s32.totalorder (!%p516_p2), %s1435_s25, 1  ;;  %s2139_s1 = sld [smem:[#allocation4_spill]] (!%p516_p2) }
   0xa   : > { %519 = sbr.rel (%p516_p2) target bundleno = 818 (0x332), region = 88  ;;  %s2140_s28 = sld [smem:[#allocation3_spill]] (!%p516_p2) }
   0xb   : > { %s1729_s18 = smov (!%p516_p2), 96   ;;  %s1730_s19 = smov (!%p516_p2), 112  }
   0xc   : > { %s1734_s17 = smov (!%p516_p2), 16   ;;  %s2142_s22 = sld [smem:[#allocation6_spill]] (!%p516_p2) }
   0xf   : > { %v667_v0 = vld [vmem:[%s2118_s4] sm:$0xff]  ;;  %vm646_vm0 = vcmask 1040384   ;;  %v1726_v1 = vmov 0   ;;  %s2145_s25 = smov (!%p580_p3, %s1435_s25), 1  ;;  %vm647_vm1 = vcmask 1041408   ;;  %v1727_v2 = vmov 65535  }
  0x10   : > { %1540 = vset.pattern.permute.xlu0 %v1726_v1  ;;  %1541 = vset.pattern.permute.xlu1 %v1726_v1  ;;  %v648_v3 = vsel %vm646_vm0, 4294967295, %v1727_v2  ;;  %v883_v4 = vld [vmem:[%s2126_s12] sm:$0xff]  ;;  %s1441_s0 = sshll.u32 %s2145_s25, 2  ;;  %vm619_vm2 = vcmask 1043456   ;;  %s1440_s30 = sshll.u32 %s2145_s25, 1  ;;  %v668_v8 = vld [vmem:[%s2118_s4 + $0x8] sm:$0xff] }
  0x11   : > { %671 = vperm.xlu0 %1540, %v667_v0   ;;  %1542 = vset.pattern.permute.xlu2 %v1726_v1  ;;  %s587_s20 = scalar_lea.vmem %s2139_s1, %s1441_s0  ;;  %s592_s23 = scalar_lea.vmem %s2122_s8, %s1441_s0  ;;  %v1849_v5 = vsel %vm647_vm1, %v648_v3, 0  ;;  %v1513_v11 = vld [vmem:[%s2117_s3] sm:$0xff]  ;;  %vm615_vm3 = vcmask 64512   ;;  %v884_v16 = vld [vmem:[%s2126_s12 + $0x8] sm:$0xff]  ;;  %vm642_vm4 = vcmask 23552   ;;  %v911_v32 = vld [vmem:[%s2128_s14 + $0x10] sm:$0xff] }
  0x12   : > { %887 = vperm.xlu1 %1541, %v883_v4   ;;  %v609_v6 = vld [vmem:[%s587_s20] sm:$0xf]  ;;  %s583_s29 = scalar_lea.vmem %s2140_s28, %s1440_s30  ;;  %s1510_s15 = sshll.u32 %s2145_s25, 3  ;;  %v687_v23 = vld [vmem:[%s2120_s6 + $0x8] sm:$0xff]  ;;  %925 = vperm.xlu2 %1542, %v911_v32   ;;  %vm703_vm5 = vcmask 130048   ;;  %v912_v50 = vld [vmem:[%s2128_s14 + $0x18] sm:$0xff] }
  0x13   : > { %v788_v7 = vld [vmem:[%s592_s23] sm:$0xf]  ;;  %v621_v9 = vsel %vm619_vm2, %v609_v6, 0  ;;  %s597_s20 = scalar_lea.vmem %s2123_s9, %s1510_s15  ;;  %v910_v25 = vld [vmem:[%s2128_s14 + $0x8] sm:$0xff]  ;;  %s1731_s0 = smov 48   ;;  %vm1247_vm6 = vcmask 261120  }
  0x14   : > { %845 = vst [vmem:[#allocation1] ss:$4 sm:$0xff] %v788_v7  ;;  %v606_v10 = vld [vmem:[%s583_s29] sm:$0x3]  ;;  %630 = vmatpush.bf16.msra.mxu0 %v621_v9  ;;  %v1917_v62 = vld [vmem:[%s2127_s13 + $0x8] sm:$0xff]  ;;  %s1728_s29 = smov 64  }
  0x15   : > { %v651_v12 = vand.u32 %v1849_v5, %v606_v10  ;;  %v791_v13 = vld [vmem:[%s597_s20] sm:$0xff]  ;;  %s1732_s1 = smov 80   ;;  %s1733_s20 = smov 32  }
  0x16   : > { %v1512_v14 = vld [vmem:[%s2116_s2] sm:$0xff]  ;;  %v798_v15 = vunpack.c.l.b16 %v791_v13  ;;  %v799_v26 = vunpack.c.h.b16 %v791_v13  ;;  %s1511_s30 = sshll.u32 %s2145_s25, 5 }
  0x17   : > { %660 = vmatpush.bf16.msra.mxu1 %v651_v12  ;;  %1452 = vmatmul.msk.bf16.vlgmr.msra.gmra.mxu0 %vm615_vm3, %v1513_v11  ;;  %v1518_v19 = vld [vmem:[%s2125_s11] sm:$0xff]  ;;  %s602_s23 = scalar_lea.vmem %s2142_s22, %s1511_s30 }
  0x18   : > { %v800_v17 = vpack.c.b16 %v798_v15, %v798_v15  ;;  %v909_v21 = vld [vmem:[%s2128_s14] sm:$0xff]  ;;  %v801_v27 = vpack.c.b16 %v799_v26, %v799_v26 }
  0x19   : > { %676 = vperm.xlu0 %1540, %v668_v8   ;;  %v1517_v24 = vld [vmem:[%s2124_s10] sm:$0xff] }
  0x1a   : > { %892 = vperm.xlu1 %1541, %v884_v16   ;;  %1457 = vmatmul.msk.bf16.vlgmr.msra.gmra.mxu1 %vm642_vm4, %v1512_v14  ;;  %v806_v18 = vsel %vm619_vm2, %v800_v17, 0  ;;  %v809_v29 = vsel %vm619_vm2, %v801_v27, 0  ;;  %v1514_v48 = vld [vmem:[%s2119_s5] sm:$0xff] }
  0x1b   : > { %818 = vmatpush.bf16.msra.mxu3 %v806_v18  ;;  %v846_v20 = vld.sshfl [vmem:[#allocation1] sm:$0xff pattern:$0x73625140]  ;;  %832 = vmatpush.bf16.msrb.mxu0 %v809_v29  ;;  %v847_v40 = vld.sshfl [vmem:[#allocation1 + $0x8] sm:$0xff pattern:$0x73625140] }
  0x1c   : > { %v851_v22 = vand.u32 %v846_v20, %v1849_v5  ;;  %v853_v45 = vand.u32 %v847_v40, %v1849_v5  ;;  %930 = vperm.xlu2 %1542, %v912_v50   ;;  %v686_v56 = vld [vmem:[%s2120_s6] sm:$0xff] }
  0x1d   : > { %v1519_v61 = vld [vmem:[%s2127_s13] sm:$0xff] }
  0x1e   : > { %1467 = vmatmul.msk.bf16.vlgmr.msra.gmra.mxu3 %vm615_vm3, %v1518_v19  ;;  %862 = vmatpush.bf16.msrb.mxu1 %v851_v22 }
  0x21   : > { %915 = vperm.xlu0 %1540, %v909_v21  }
  0x22   : > { %920 = vperm.xlu1 %1541, %v910_v25  }
  0x24   : > { %690 = vperm.xlu2 %1542, %v686_v56  }
  0x27   : > { %1468 = vmatmul.msk.bf16.vlgmr.msrb.gmra.mxu0 %vm615_vm3, %v1518_v19 }
  0x29   : > { %695 = vperm.xlu0 %1540, %v687_v23  }
  0x2a   : > { %1473 = vmatmul.msk.bf16.vlgmr.msrb.gmra.mxu1 %vm642_vm4, %v1517_v24 }
  0x6c   : > { %v1921_v63 = vpop.permute.xlu2 %925 }
  0x76   : > { %v1923_v0 = vpop.permute.xlu2 %930 }
  0x7e   : > { %v691_v3 = vpop.permute.xlu2 %690 }
  0x83   : > { %v672_v30 = vpop.permute.xlu0 %671 }
  0x84   : > { %v888_v44 = vpop.permute.xlu1 %887 }
  0x8b   : > { %v677_v38 = vpop.permute.xlu0 %676 }
  0x8c   : > { %v893_v54 = vpop.permute.xlu1 %892 }
  0x93   : > { %v1925_v1 = vpop.permute.xlu0 %915 }
  0x94   : > { %v632_v28 = vpop.f32.mrf.mxu0  ;;  %v1940_v15 = vpop.permute.xlu1 %920 }
  0x97   : > { %v662_v31 = vpop.f32.mrf.mxu1 }
  0x98   : > { %v663_v33 = vadd.f32 %v662_v31, %v632_v28 }
  0x9a   : > { %v679_v37 = vadd.f32 %v672_v30, %v663_v33 }
  0x9b   : > { %v696_v5 = vpop.permute.xlu0 %695 }
  0x9c   : > { %v634_v34 = vpop.f32.mrf.mxu0  ;;  %v681_v42 = vmax.f32 %v679_v37, 0.0 }
  0x9f   : > { %v664_v35 = vpop.f32.mrf.mxu1 }
  0xa0   : > { %v665_v36 = vadd.f32 %v664_v35, %v634_v34 }
  0xa1   : > { %v820_v41 = vpop.f32.mrf.mxu3 }
  0xa2   : > { %v680_v39 = vadd.f32 %v677_v38, %v665_v36 }
  0xa4   : > { %v682_v43 = vmax.f32 %v680_v39, 0.0  ;;  %v834_v10 = vpop.f32.mrf.mxu0 }
  0xa6   : > { %v685_v46 = vpack.c.bf16 %v682_v43, %v681_v42 }
  0xa7   : > { %v864_v47 = vpop.f32.mrf.mxu1 }
  0xa8   : > { %714 = vmatpush.bf16.msra.mxu2 %v685_v46  ;;  %v865_v49 = vadd.f32 %v864_v47, %v820_v41 }
  0xa9   : > { %v822_v51 = vpop.f32.mrf.mxu3 }
  0xaa   : > { %v895_v52 = vadd.f32 %v888_v44, %v865_v49 }
  0xab   : > { %1462 = vmatmul.msk.bf16.vlgmr.msra.gmra.mxu2 %vm703_vm5, %v1514_v48 }
  0xac   : > { %876 = vmatpush.bf16.msrb.mxu2 %v853_v45  ;;  %v899_v57 = vmax.f32 %v895_v52, 0.0  ;;  %v836_v16 = vpop.f32.mrf.mxu0 }
  0xaf   : > { %v866_v53 = vpop.f32.mrf.mxu1 }
  0xb0   : > { %v867_v55 = vadd.f32 %v866_v53, %v822_v51 }
  0xb2   : > { %v897_v58 = vadd.f32 %v893_v54, %v867_v55 }
  0xb4   : > { %v901_v59 = vmax.f32 %v897_v58, 0.0 }
  0xb6   : > { %v907_v60 = vpack.c.bf16 %v901_v59, %v899_v57 }
  0xb8   : > { %956 = vmatpush.bf16.msrb.mxu3 %v907_v60 }
  0xbb   : > { %1474 = vmatmul.msk.bf16.vlgmr.msrb.gmra.mxu2 %vm642_vm4, %v1517_v24  ;;  %1483 = vmatmul.msk.bf16.vlgmr.msrb.gmra.mxu3 %vm703_vm5, %v1519_v61 }
  0xcb   : > { %1484 = vmatmul.msk.bf16.gmra.mxu3 %vm703_vm5, %v1917_v62 }
 0x12e   : > { %v716_v2 = vpop.f32.mrf.mxu2 }
 0x12f   : > { %v1927_v4 = vadd.f32 %v716_v2, %v691_v3 }
 0x131   : > { %v721_v8 = vmax.f32 %v1927_v4, 0.0 }
 0x136   : > { %v718_v6 = vpop.f32.mrf.mxu2 }
 0x137   : > { %v1929_v7 = vadd.f32 %v718_v6, %v696_v5 }
 0x139   : > { %v722_v9 = vmax.f32 %v1929_v7, 0.0 }
 0x13b   : > { %v1558_v11 = vpack.i.bf16 %v722_v9, %v721_v8 }
 0x13d   : > { %1559 = vrot.lane.b32.xlu2 %v1558_v11, %s1728_s29  ;;  %1549 = vrot.lane.b32.xlu0 %v1558_v11, %s1729_s18 }
 0x13e   : > { %1544 = vrot.lane.b32.xlu1 %v1558_v11, %s1730_s19  ;;  %v878_v12 = vpop.f32.mrf.mxu2  ;;  %v958_v13 = vpop.f32.mrf.mxu3 }
 0x13f   : > { %v879_v14 = vadd.f32 %v878_v12, %v834_v10  ;;  %v1943_v17 = vadd.f32 %v958_v13, %v1925_v1 }
 0x141   : > { %v896_v20 = vadd.f32 %v888_v44, %v879_v14  ;;  %v987_v23 = vmax.f32 %v1943_v17, 0.0 }
 0x143   : > { %v900_v26 = vmax.f32 %v896_v20, 0.0 }
 0x145   : > { %1564 = vrot.lane.b32.xlu2 %v1558_v11, %s1731_s0  ;;  %1554 = vrot.lane.b32.xlu0 %v1558_v11, %s1732_s1 }
 0x146   : > { %v880_v18 = vpop.f32.mrf.mxu2  ;;  %v960_v19 = vpop.f32.mrf.mxu3 }
 0x147   : > { %v881_v21 = vadd.f32 %v880_v18, %v836_v16  ;;  %v1948_v22 = vadd.f32 %v960_v19, %v1940_v15 }
 0x149   : > { %v898_v24 = vadd.f32 %v893_v54, %v881_v21  ;;  %v989_v25 = vmax.f32 %v1948_v22, 0.0 }
 0x14b   : > { %v902_v27 = vmax.f32 %v898_v24, 0.0  ;;  %v1578_v28 = vpack.i.bf16 %v989_v25, %v987_v23 }
 0x14d   : > { %v908_v29 = vpack.c.bf16 %v902_v27, %v900_v26  ;;  %1569 = vrot.lane.b32.xlu2 %v1558_v11, %s1733_s20  ;;  %1579 = vrot.lane.b32.xlu0 %v1578_v28, %s1730_s19 }
 0x14e   : > { %1589 = vrot.lane.b32.xlu1 %v1578_v28, %s1732_s1  ;;  %v963_v30 = vpop.f32.mrf.mxu3 }
 0x14f   : > { %975 = vmatpush.bf16.msra.mxu0 %v908_v29  ;;  %v1961_v31 = vadd.f32 %v963_v30, %v1921_v63  ;;  %v1311_v29 = vld [vmem:[%s2130_s16 + $0x18] sm:$0xff]  ;;  %v1309_v30 = vld [vmem:[%s2130_s16 + $0x8] sm:$0xff] }
 0x151   : > { %v991_v33 = vmax.f32 %v1961_v31, 0.0 }
 0x152   : > { %1485 = vmatmul.msk.bf16.vlgmr.msra.gmra.mxu0 %vm703_vm5, %v1519_v61 }
 0x155   : > { %1574 = vrot.lane.b32.xlu2 %v1558_v11, %s1734_s17  ;;  %1594 = vrot.lane.b32.xlu0 %v1578_v28, %s1728_s29 }
 0x156   : > { %1609 = vrot.lane.b32.xlu1 %v1578_v28, %s1734_s17  ;;  %v965_v32 = vpop.f32.mrf.mxu3 }
 0x157   : > { %v1968_v34 = vadd.f32 %v965_v32, %v1923_v0 }
 0x159   : > { %v993_v35 = vmax.f32 %v1968_v34, 0.0  ;;  %v1515_v34 = vld [vmem:[%s2121_s7] sm:$0xff] }
 0x15b   : > { %v1613_v36 = vpack.i.bf16 %v993_v35, %v991_v33 }
 0x15d   : > { %1584 = vrot.lane.b32.xlu2 %v1578_v28, %s1729_s18  ;;  %1629 = vrot.lane.b32.xlu0 %v1613_v36, %s1728_s29 }
 0x15e   : > { %1614 = vrot.lane.b32.xlu1 %v1613_v36, %s1730_s19 }
 0x162   : > { %1486 = vmatmul.msk.bf16.gmra.mxu0 %vm703_vm5, %v1917_v62 }
 0x165   : > { %1599 = vrot.lane.b32.xlu2 %v1578_v28, %s1731_s0  ;;  %1644 = vrot.lane.b32.xlu0 %v1613_v36, %s1734_s17 }
 0x166   : > { %1624 = vrot.lane.b32.xlu1 %v1613_v36, %s1732_s1 }
 0x16d   : > { %1604 = vrot.lane.b32.xlu2 %v1578_v28, %s1733_s20 }
 0x16e   : > { %1639 = vrot.lane.b32.xlu1 %v1613_v36, %s1733_s20 }
 0x175   : > { %1619 = vrot.lane.b32.xlu2 %v1613_v36, %s1729_s18 }
 0x17d   : > { %1634 = vrot.lane.b32.xlu2 %v1613_v36, %s1731_s0 }
 0x197   : > { %v1560_v37 = vpop.permute.xlu2 %1559 }
 0x198   : > { %v1562_v53 = vunpack.i.h.bf16 %v1560_v37  ;;  %v1561_v54 = vunpack.i.l.bf16 %v1560_v37 }
 0x19f   : > { %v1565_v38 = vpop.permute.xlu2 %1564 }
 0x1a0   : > { %v1567_v57 = vunpack.i.h.bf16 %v1565_v38  ;;  %v1566_v58 = vunpack.i.l.bf16 %v1565_v38 }
 0x1a7   : > { %v1570_v43 = vpop.permute.xlu2 %1569 }
 0x1a8   : > { %v1572_v62 = vunpack.i.h.bf16 %v1570_v43  ;;  %v1571_v2 = vunpack.i.l.bf16 %v1570_v43 }
 0x1af   : > { %v1550_v39 = vpop.permute.xlu0 %1549  ;;  %v1575_v61 = vpop.permute.xlu2 %1574 }
 0x1b0   : > { %v1545_v40 = vpop.permute.xlu1 %1544  ;;  %v1552_v46 = vunpack.i.h.bf16 %v1550_v39  ;;  %v1551_v47 = vunpack.i.l.bf16 %v1550_v39  ;;  %v1577_v5 = vunpack.i.h.bf16 %v1575_v61  ;;  %v1576_v6 = vunpack.i.l.bf16 %v1575_v61 }
 0x1b1   : > { %v1547_v41 = vunpack.i.h.bf16 %v1545_v40  ;;  %v1546_v42 = vunpack.i.l.bf16 %v1545_v40 }
 0x1b3   : > { %v732_v44 = vmax.f32 %v722_v9, %v1547_v41  ;;  %v731_v45 = vmax.f32 %v721_v8, %v1546_v42 }
 0x1b5   : > { %v739_v51 = vmax.f32 %v731_v45, %v1551_v47  ;;  %v740_v52 = vmax.f32 %v732_v44, %v1552_v46 }
 0x1b7   : > { %v1555_v48 = vpop.permute.xlu0 %1554  ;;  %v1585_v39 = vpop.permute.xlu2 %1584 }
 0x1b8   : > { %v1557_v49 = vunpack.i.h.bf16 %v1555_v48  ;;  %v1556_v50 = vunpack.i.l.bf16 %v1555_v48 }
 0x1ba   : > { %v747_v55 = vmax.f32 %v739_v51, %v1556_v50  ;;  %v748_v56 = vmax.f32 %v740_v52, %v1557_v49 }
 0x1bc   : > { %v755_v59 = vmax.f32 %v747_v55, %v1561_v54  ;;  %v756_v60 = vmax.f32 %v748_v56, %v1562_v53 }
 0x1be   : > { %v763_v3 = vmax.f32 %v755_v59, %v1566_v58  ;;  %v764_v4 = vmax.f32 %v756_v60, %v1567_v57 }
 0x1bf   : > { %v1580_v36 = vpop.permute.xlu0 %1579  ;;  %v1600_v42 = vpop.permute.xlu2 %1599 }
 0x1c0   : > { %v771_v7 = vmax.f32 %v763_v3, %v1571_v2  ;;  %v772_v8 = vmax.f32 %v764_v4, %v1572_v62  ;;  %v1590_v32 = vpop.permute.xlu1 %1589  ;;  %v1582_v53 = vunpack.i.h.bf16 %v1580_v36  ;;  %v1581_v54 = vunpack.i.l.bf16 %v1580_v36 }
 0x1c1   : > { %v1586_v4 = vunpack.i.l.bf16 %v1585_v39 }
 0x1c2   : > { %v779_v9 = vmax.f32 %v771_v7, %v1576_v6  ;;  %v780_v10 = vmax.f32 %v772_v8, %v1577_v5  ;;  %v1012_v62 = vmax.f32 %v989_v25, %v1582_v53  ;;  %v1011_v31 = vmax.f32 %v987_v23, %v1581_v54 }
 0x1c4   : > { %v785_v11 = vpack.c.bf16 %v780_v10, %v779_v9  ;;  %v1027_v8 = vmax.f32 %v1011_v31, %v1586_v4  ;;  %v1592_v9 = vunpack.i.h.bf16 %v1590_v32  ;;  %v1591_v10 = vunpack.i.l.bf16 %v1590_v32 }
 0x1c6   : > { %1296 = vmatpush.bf16.msra.mxu2 %v785_v11 }
 0x1c7   : > { %v1595_v38 = vpop.permute.xlu0 %1594  ;;  %v2045_v45 = vpop.permute.xlu2 %1604 }
 0x1c8   : > { %v2041_v37 = vpop.permute.xlu1 %1609  ;;  %v1597_v11 = vunpack.i.h.bf16 %v1595_v38  ;;  %v1607_v54 = vunpack.i.h.bf16 %v2045_v45 }
 0x1c9   : > { %1505 = vmatmul.msk.bf16.vlgmr.msra.gmra.mxu2 %vm703_vm5, %v1515_v34 }
 0x1cf   : > { %v977_v12 = vpop.f32.mrf.mxu0  ;;  %v1630_v41 = vpop.permute.xlu0 %1629 }
 0x1d0   : > { %v1992_v13 = vadd.f32 %v977_v12, %v1925_v1  ;;  %v1615_v40 = vpop.permute.xlu1 %1614  ;;  %v1620_v49 = vpop.permute.xlu2 %1619  ;;  %v1631_v3 = vunpack.i.l.bf16 %v1630_v41  ;;  %v1632_v7 = vunpack.i.h.bf16 %v1630_v41  ;;  %v1596_v12 = vunpack.i.l.bf16 %v1595_v38 }
 0x1d1   : > { %v1616_v48 = vunpack.i.l.bf16 %v1615_v40  ;;  %v1617_v50 = vunpack.i.h.bf16 %v1615_v40  ;;  %v1621_v52 = vunpack.i.l.bf16 %v1620_v49  ;;  %v1622_v57 = vunpack.i.h.bf16 %v1620_v49 }
 0x1d2   : > { %v988_v18 = vmax.f32 %v1992_v13, 0.0 }
 0x1d3   : > { %v1013_v51 = vmax.f32 %v991_v33, %v1616_v48  ;;  %v1014_v56 = vmax.f32 %v993_v35, %v1617_v50  ;;  %v1587_v35 = vunpack.i.h.bf16 %v1585_v39  ;;  %v1601_v48 = vunpack.i.l.bf16 %v1600_v42 }
 0x1d5   : > { %v1029_v60 = vmax.f32 %v1013_v51, %v1621_v52  ;;  %v1030_v33 = vmax.f32 %v1014_v56, %v1622_v57  ;;  %v1028_v22 = vmax.f32 %v1012_v62, %v1587_v35  ;;  %v1516_v56 = vld [vmem:[%s2121_s7 + $0x8] sm:$0xff] }
 0x1d7   : > { %v979_v14 = vpop.f32.mrf.mxu0  ;;  %v2043_v44 = vpop.permute.xlu0 %1644 }
 0x1d8   : > { %v1995_v16 = vadd.f32 %v979_v14, %v1940_v15  ;;  %v1625_v43 = vpop.permute.xlu1 %1624  ;;  %v1635_v5 = vpop.permute.xlu2 %1634  ;;  %v1646_v41 = vunpack.i.l.bf16 %v2043_v44  ;;  %v1647_v38 = vunpack.i.h.bf16 %v2043_v44 }
 0x1d9   : > { %v1626_v58 = vunpack.i.l.bf16 %v1625_v43  ;;  %v1627_v61 = vunpack.i.h.bf16 %v1625_v43  ;;  %v1636_v23 = vunpack.i.l.bf16 %v1635_v5  ;;  %v1602_v43 = vunpack.i.h.bf16 %v1600_v42  ;;  %1506 = vmatmul.msk.bf16.gmra.mxu2 %vm703_vm5, %v1516_v56 }
 0x1da   : > { %v990_v19 = vmax.f32 %v1995_v16, 0.0 }
 0x1db   : > { %v1045_v2 = vmax.f32 %v1029_v60, %v1626_v58  ;;  %v1046_v6 = vmax.f32 %v1030_v33, %v1627_v61 }
 0x1dc   : > { %v1648_v20 = vpack.i.bf16 %v990_v19, %v988_v18 }
 0x1dd   : > { %v1061_v17 = vmax.f32 %v1045_v2, %v1631_v3  ;;  %v1062_v14 = vmax.f32 %v1046_v6, %v1632_v7  ;;  %v1612_v2 = vunpack.i.h.bf16 %v2041_v37  ;;  %v1611_v3 = vunpack.i.l.bf16 %v2041_v37 }
 0x1de   : > { %1649 = vrot.lane.b32.xlu0 %v1648_v20, %s1730_s19 }
 0x1df   : > { %v982_v21 = vpop.f32.mrf.mxu0 }
 0x1e0   : > { %v2005_v24 = vadd.f32 %v982_v21, %v1921_v63  ;;  %v1310_v63 = vld [vmem:[%s2130_s16 + $0x10] sm:$0xff]  ;;  %v1640_v46 = vpop.permute.xlu1 %1639 }
 0x1e1   : > { %v1641_v21 = vunpack.i.l.bf16 %v1640_v46 }
 0x1e2   : > { %v992_v26 = vmax.f32 %v2005_v24, 0.0 }
 0x1e6   : > { %1654 = vrot.lane.b32.xlu0 %v1648_v20, %s1729_s18 }
 0x1e7   : > { %v984_v1 = vpop.f32.mrf.mxu0 }
 0x1e8   : > { %v2009_v15 = vadd.f32 %v984_v1, %v1923_v0  ;;  %v1308_v0 = vld [vmem:[%s2130_s16] sm:$0xff]  ;;  %v1044_v1 = vmax.f32 %v1028_v22, %v1592_v9 }
 0x1ea   : > { %v994_v27 = vmax.f32 %v2009_v15, 0.0  ;;  %v1060_v36 = vmax.f32 %v1044_v1, %v1597_v11 }
 0x1ec   : > { %v1668_v28 = vpack.i.bf16 %v994_v27, %v992_v26  ;;  %v1076_v51 = vmax.f32 %v1060_v36, %v1602_v43 }
 0x1ee   : > { %1669 = vrot.lane.b32.xlu2 %v1668_v28, %s1730_s19  ;;  %1659 = vrot.lane.b32.xlu0 %v1648_v20, %s1732_s1  ;;  %v1092_v61 = vmax.f32 %v1076_v51, %v1607_v54 }
 0x1ef   : > { %1679 = vrot.lane.b32.xlu1 %v1668_v28, %s1729_s18 }
 0x1f0   : > { %v1108_v15 = vmax.f32 %v1092_v61, %v1612_v2 }
 0x1f6   : > { %1674 = vrot.lane.b32.xlu2 %v1648_v20, %s1731_s0  ;;  %1664 = vrot.lane.b32.xlu0 %v1648_v20, %s1728_s29 }
 0x1f7   : > { %1684 = vrot.lane.b32.xlu1 %v1668_v28, %s1732_s1 }
 0x1fe   : > { %1714 = vrot.lane.b32.xlu2 %v1648_v20, %s1734_s17  ;;  %1704 = vrot.lane.b32.xlu0 %v1668_v28, %s1734_s17 }
 0x1ff   : > { %1689 = vrot.lane.b32.xlu1 %v1668_v28, %s1728_s29 }
 0x206   : > { %1324 = vperm.xlu2 %1542, %v1310_v63   ;;  %1314 = vperm.xlu0 %1540, %v1308_v0   ;;  %v1077_v0 = vmax.f32 %v1061_v17, %v1636_v23  ;;  %v1112_v17 = vmax.f32 %v1108_v15, %v990_v19 }
 0x207   : > { %1694 = vrot.lane.b32.xlu1 %v1668_v28, %s1731_s0 }
 0x208   : > { %v1093_v40 = vmax.f32 %v1077_v0, %v1641_v21 }
 0x20a   : > { %v1109_v53 = vmax.f32 %v1093_v40, %v1646_v41 }
 0x20c   : > { %v1113_v44 = vmax.f32 %v1109_v53, %v992_v26 }
 0x20e   : > { %1329 = vperm.xlu0 %1540, %v1311_v29   ;;  %v1642_v29 = vunpack.i.h.bf16 %v1640_v46  ;;  %v1606_v46 = vunpack.i.l.bf16 %v2045_v45 }
 0x20f   : > { %1699 = vrot.lane.b32.xlu1 %v1668_v28, %s1733_s20  ;;  %v1043_v28 = vmax.f32 %v1027_v8, %v1591_v10 }
 0x217   : > { %1709 = vrot.lane.b32.xlu1 %v1648_v20, %s1733_s20  ;;  %v1637_v20 = vunpack.i.h.bf16 %v1635_v5  ;;  %s2141_s20 = sld [smem:[#allocation5_spill]] }
 0x219   : > { %v1078_v39 = vmax.f32 %v1062_v14, %v1637_v20 }
 0x21b   : > { %v1094_v49 = vmax.f32 %v1078_v39, %v1642_v29 }
 0x21d   : > { %v1110_v57 = vmax.f32 %v1094_v49, %v1647_v38 }
 0x21f   : > { %1319 = vperm.xlu1 %1541, %v1309_v30   ;;  %v1059_v30 = vmax.f32 %v1043_v28, %v1596_v12  ;;  %v1114_v31 = vmax.f32 %v1110_v57, %v994_v27 }
 0x221   : > { %v1075_v50 = vmax.f32 %v1059_v30, %v1601_v48 }
 0x223   : > { %v1091_v42 = vmax.f32 %v1075_v50, %v1606_v46 }
 0x225   : > { %v1107_v26 = vmax.f32 %v1091_v42, %v1611_v3 }
 0x227   : > { %v1111_v37 = vmax.f32 %v1107_v26, %v988_v18 }
 0x248   : > { %v1670_v52 = vpop.permute.xlu2 %1669 }
 0x249   : > { %v1672_v58 = vunpack.i.h.bf16 %v1670_v52  ;;  %v1671_v60 = vunpack.i.l.bf16 %v1670_v52 }
 0x24b   : > { %v1133_v35 = vmax.f32 %v1113_v44, %v1671_v60  ;;  %v1134_v4 = vmax.f32 %v1114_v31, %v1672_v58 }
 0x250   : > { %v2047_v47 = vpop.permute.xlu0 %1649  ;;  %v1675_v14 = vpop.permute.xlu2 %1674 }
 0x251   : > { %v1652_v27 = vunpack.i.h.bf16 %v2047_v47  ;;  %v1651_v6 = vunpack.i.l.bf16 %v2047_v47  ;;  %v1677_v53 = vunpack.i.h.bf16 %v1675_v14  ;;  %v1676_v54 = vunpack.i.l.bf16 %v1675_v14 }
 0x253   : > { %v1131_v47 = vmax.f32 %v1111_v37, %v1651_v6  ;;  %v1132_v20 = vmax.f32 %v1112_v17, %v1652_v27 }
 0x258   : > { %v2055_v59 = vpop.permute.xlu0 %1654  ;;  %v1715_v56 = vpop.permute.xlu2 %1714 }
 0x259   : > { %v1657_v23 = vunpack.i.h.bf16 %v2055_v59  ;;  %v1716_v44 = vunpack.i.l.bf16 %v1715_v56 }
 0x25b   : > { %v1148_v16 = vmax.f32 %v1132_v20, %v1657_v23 }
 0x260   : > { %v2067_v63 = vpop.permute.xlu0 %1659 }
 0x261   : > { %v2051_v55 = vpop.permute.xlu1 %1679  ;;  %v1662_v21 = vunpack.i.h.bf16 %v2067_v63  ;;  %v1661_v1 = vunpack.i.l.bf16 %v2067_v63 }
 0x262   : > { %v1682_v33 = vunpack.i.h.bf16 %v2051_v55  ;;  %v1681_v45 = vunpack.i.l.bf16 %v2051_v55 }
 0x263   : > { %v1164_v43 = vmax.f32 %v1148_v16, %v1662_v21 }
 0x264   : > { %v1149_v55 = vmax.f32 %v1133_v35, %v1681_v45  ;;  %v1150_v7 = vmax.f32 %v1134_v4, %v1682_v33  ;;  %v1522_v35 = vld [vmem:[%s2141_s20 + $0x8] sm:$0xff]  ;;  %v1298_v4 = vpop.f32.mrf.mxu2 }
 0x268   : > { %v1665_v62 = vpop.permute.xlu0 %1664 }
 0x269   : > { %v2065_v25 = vpop.permute.xlu1 %1684  ;;  %v1667_v19 = vunpack.i.h.bf16 %v1665_v62  ;;  %v1666_v0 = vunpack.i.l.bf16 %v1665_v62  ;;  %v1717_v62 = vunpack.i.h.bf16 %v1715_v56 }
 0x26a   : > { %v1687_v5 = vunpack.i.h.bf16 %v2065_v25  ;;  %v1686_v24 = vunpack.i.l.bf16 %v2065_v25  ;;  %v1656_v25 = vunpack.i.l.bf16 %v2055_v59 }
 0x26b   : > { %v1180_v63 = vmax.f32 %v1164_v43, %v1667_v19 }
 0x26c   : > { %v1165_v9 = vmax.f32 %v1149_v55, %v1686_v24  ;;  %v1166_v10 = vmax.f32 %v1150_v7, %v1687_v5  ;;  %v1147_v28 = vmax.f32 %v1131_v47, %v1656_v25  ;;  %v1300_v27 = vpop.f32.mrf.mxu2 }
 0x26d   : > { %v1196_v61 = vmax.f32 %v1180_v63, %v1677_v53 }
 0x26e   : > { %v1163_v41 = vmax.f32 %v1147_v28, %v1661_v1 }
 0x270   : > { %v1705_v29 = vpop.permute.xlu0 %1704  ;;  %v1179_v50 = vmax.f32 %v1163_v41, %v1666_v0 }
 0x271   : > { %v1690_v32 = vpop.permute.xlu1 %1689  ;;  %v1707_v48 = vunpack.i.h.bf16 %v1705_v29 }
 0x272   : > { %v1692_v8 = vunpack.i.h.bf16 %v1690_v32  ;;  %v1691_v22 = vunpack.i.l.bf16 %v1690_v32  ;;  %v1706_v32 = vunpack.i.l.bf16 %v1705_v29  ;;  %v1195_v42 = vmax.f32 %v1179_v50, %v1676_v54 }
 0x274   : > { %v1181_v13 = vmax.f32 %v1165_v9, %v1691_v22  ;;  %v1182_v18 = vmax.f32 %v1166_v10, %v1692_v8  ;;  %v1303_v17 = vpop.f32.mrf.mxu2  ;;  %v1325_v9 = vpop.permute.xlu2 %1324 }
 0x278   : > { %v1315_v26 = vpop.permute.xlu0 %1314 }
 0x279   : > { %v1695_v34 = vpop.permute.xlu1 %1694 }
 0x27a   : > { %v1697_v11 = vunpack.i.h.bf16 %v1695_v34  ;;  %v1696_v12 = vunpack.i.l.bf16 %v1695_v34  ;;  %v1521_v34 = vld [vmem:[%s2141_s20] sm:$0xff] }
 0x27c   : > { %v1197_v59 = vmax.f32 %v1181_v13, %v1696_v12  ;;  %v1198_v36 = vmax.f32 %v1182_v18, %v1697_v11  ;;  %v1305_v14 = vpop.f32.mrf.mxu2 }
 0x280   : > { %v1330_v20 = vpop.permute.xlu0 %1329 }
 0x281   : > { %v1700_v30 = vpop.permute.xlu1 %1699 }
 0x282   : > { %v1702_v39 = vunpack.i.h.bf16 %v1700_v30  ;;  %v1701_v40 = vunpack.i.l.bf16 %v1700_v30 }
 0x284   : > { %v1213_v49 = vmax.f32 %v1197_v59, %v1701_v40  ;;  %v1214_v38 = vmax.f32 %v1198_v36, %v1702_v39 }
 0x286   : > { %v1229_v51 = vmax.f32 %v1213_v49, %v1706_v32  ;;  %v1230_v52 = vmax.f32 %v1214_v38, %v1707_v48 }
 0x288   : > { %v1236_v46 = vpack.c.bf16 %v1230_v52, %v1229_v51 }
 0x289   : > { %v1710_v57 = vpop.permute.xlu1 %1709 }
 0x28a   : > { %v1712_v58 = vunpack.i.h.bf16 %v1710_v57  ;;  %v1711_v60 = vunpack.i.l.bf16 %v1710_v57  ;;  %1260 = vmatpush.bf16.msra.mxu1 %v1236_v46 }
 0x28c   : > { %v1211_v31 = vmax.f32 %v1195_v42, %v1711_v60  ;;  %v1212_v33 = vmax.f32 %v1196_v61, %v1712_v58 }
 0x28e   : > { %v1227_v45 = vmax.f32 %v1211_v31, %v1716_v44  ;;  %v1228_v2 = vmax.f32 %v1212_v33, %v1717_v62 }
 0x290   : > { %v1235_v3 = vpack.c.bf16 %v1228_v2, %v1227_v45 }
 0x291   : > { %v1320_v8 = vpop.permute.xlu1 %1319 }
 0x292   : > { %1261 = vmatpush.bf16.msra.mxu1 %v1235_v3 }
 0x295   : > { %1495 = vmatmul.msk.bf16.vlgmr.msra.gmra.mxu1 %vm1247_vm6, %v1521_v34 }
 0x2a5   : > { %1496 = vmatmul.msk.bf16.gmra.mxu1 %vm1247_vm6, %v1522_v35 }
 0x312   : > { %v1263_v5 = vpop.f32.mrf.mxu1 }
 0x313   : > { %v1299_v24 = vadd.f32 %v1298_v4, %v1263_v5 }
 0x315   : > { %v1332_v15 = vadd.f32 %v1315_v26, %v1299_v24 }
 0x317   : > { %v1336_v6 = vmax.f32 %v1332_v15, 0.0 }
 0x319   : > { %1340 = vst.msk [vmem:[%s602_s23] sm:$0xff] %vm703_vm5, %v1336_v6 }
 0x31a   : > { %v1265_v55 = vpop.f32.mrf.mxu1 }
 0x31b   : > { %v1301_v7 = vadd.f32 %v1300_v27, %v1265_v55 }
 0x31d   : > { %v1333_v22 = vadd.f32 %v1320_v8, %v1301_v7 }
 0x31f   : > { %v1337_v37 = vmax.f32 %v1333_v22, 0.0 }
 0x321   : > { %1341 = vst.msk [vmem:[%s602_s23 + $0x8] sm:$0xff] %vm703_vm5, %v1337_v37 }
 0x322   : > { %v1268_v23 = vpop.f32.mrf.mxu1 }
 0x323   : > { %v1304_v25 = vadd.f32 %v1303_v17, %v1268_v23 }
 0x325   : > { %v1334_v10 = vadd.f32 %v1325_v9, %v1304_v25 }
 0x327   : > { %v1338_v11 = vmax.f32 %v1334_v10, 0.0 }
 0x329   : > { %1342 = vst.msk [vmem:[%s602_s23 + $0x10] sm:$0xff] %vm703_vm5, %v1338_v11 }
 0x32a   : > { %v1270_v12 = vpop.f32.mrf.mxu1 }
 0x32b   : > { %v1306_v47 = vadd.f32 %v1305_v14, %v1270_v12 }
 0x32d   : > { %v1335_v21 = vadd.f32 %v1330_v20, %v1306_v47 }
 0x32f   : > { %v1339_v1 = vmax.f32 %v1335_v21, 0.0 }
 0x331   : > { %1343 = vst.msk [vmem:[%s602_s23 + $0x18] sm:$0xff] %vm703_vm5, %v1339_v1 }
 0x332 PF: > { %s2143_s25 = sld [smem:[#allocation2_spill]] }
 0x338   : > { %s27_s24 = sadd.s32 1, %s2143_s25  }
 0x339   : > { %p24_p4 = scmp.ge.s32.totalorder %s27_s24, 4  }
 0x33b   :  { %26 = sbr.rel (!%p24_p4) target bundleno = 5 (0x5), region = 127 }

</bundles_post_ra>
